<compile_context>
chip_gen: v5e
topology: v5e:2x2
jax: 0.10.0
libtpu: 0.0.40
codegen_flags: <defaults>
</compile_context>

<pallas_src>
import functools

import jax
import jax.numpy as jnp
from jax.experimental import pallas as pl
from jax.experimental.pallas import tpu as pltpu


def _round_up(n, m):
    return ((n + m - 1) // m) * m


def autoencoder_kernel(x_ref, w_enc_ref, b_enc_ref, w_dec_ref, in_bias_ref,
                       y_ref, acts_ref, y_acc_ref):
    """One (batch-tile i, hidden-tile h) grid step.

    x_ref:       (TB, D)   batch tile (native dtype, fed straight to MXU)
    w_enc_ref:   (D, TH)   encoder weight slab (pre-transposed)
    b_enc_ref:   (1, TH)   folded encoder bias, f32: b_enc - input_bias @ W_enc.T
    w_dec_ref:   (TH, D)   decoder weight slab (pre-transposed, no bias)
    in_bias_ref: (1, D)    input bias, f32 (added back on decoder output)
    y_ref:       (TB, D)   reconstruction (written on last hidden step)
    acts_ref:    (TB, TH)  ReLU activations
    y_acc_ref:   (TB, D)   f32 accumulator for y across hidden tiles
    """
    h = pl.program_id(1)

    @pl.when(h == 0)
    def _():
        y_acc_ref[...] = jnp.zeros_like(y_acc_ref)

    # Encoder slab: MXU takes native-dtype operands, accumulates in f32.
    pre = jnp.dot(x_ref[...], w_enc_ref[...],
                  preferred_element_type=jnp.float32) + b_enc_ref[...]
    acts = jnp.maximum(pre, 0.0)
    acts_ref[...] = acts.astype(acts_ref.dtype)

    # Decoder partial sum for this hidden slab.
    y_acc_ref[...] += jnp.dot(acts.astype(w_dec_ref.dtype), w_dec_ref[...],
                              preferred_element_type=jnp.float32)

    @pl.when(h == pl.num_programs(1) - 1)
    def _():
        y_ref[...] = (y_acc_ref[...] + in_bias_ref[...]).astype(y_ref.dtype)


def prepare_params(w_enc, b_enc, w_dec, input_bias, *, param_dtype=None):
    """One-time parameter prep (call at load time, NOT per forward).

    w_enc:      (H, D_in)  -- torch Linear(input_dim, hidden_dim).weight
    b_enc:      (H,)
    w_dec:      (D_in, H)  -- torch Linear(hidden_dim, input_dim, bias=False).weight
    input_bias: (D_in,)
    """
    w_enc = jnp.asarray(w_enc)
    w_dec = jnp.asarray(w_dec)
    b_enc = jnp.asarray(b_enc, dtype=jnp.float32)
    input_bias = jnp.asarray(input_bias, dtype=jnp.float32)

    # (x - b) @ We.T + be  ==  x @ We.T + (be - b @ We.T): fold the subtraction.
    b_enc_folded = b_enc - jnp.dot(input_bias, w_enc.astype(jnp.float32).T)

    w_enc_t = w_enc.T                      # (D_in, H)
    w_dec_t = w_dec.T                      # (H, D_in)
    if param_dtype is not None:            # e.g. jnp.bfloat16 for MXU fast path
        w_enc_t = w_enc_t.astype(param_dtype)
        w_dec_t = w_dec_t.astype(param_dtype)

    return dict(
        w_enc_t=w_enc_t,
        b_enc=b_enc_folded.reshape(1, -1),
        w_dec_t=w_dec_t,
        input_bias=input_bias.reshape(1, -1),
    )


@functools.partial(jax.jit, static_argnames=("tile_b", "tile_h"))
def autoencoder_forward(x, params, *, tile_b=128, tile_h=512):
    """Pallas forward for AutoEncoder. Returns (y, acts)."""
    w_enc_t = params["w_enc_t"]
    b_enc = params["b_enc"]
    w_dec_t = params["w_dec_t"]
    in_bias = params["input_bias"]

    B, D_in = x.shape
    H = w_enc_t.shape[1]

    # Effective tiles: hidden tiles lane-dense (>=128, multiple of 128), batch
    # tiles MXU-friendly; clamp for small problems and pad ragged shapes.
    tb = min(tile_b, _round_up(B, 8))
    th = min(tile_h, _round_up(H, 128))
    b_pad = _round_up(B, tb)
    h_pad = _round_up(H, th)
    d_pad = _round_up(D_in, 128)           # lane-dense y / x last dim

    if b_pad != B or d_pad != D_in:
        x = jnp.pad(x, ((0, b_pad - B), (0, d_pad - D_in)))
    if h_pad != H or d_pad != D_in:
        # Zero-padded hidden units give zero acts and contribute nothing to y;
        # zero-padded input dims produce zero y columns (sliced off below).
        w_enc_t = jnp.pad(w_enc_t, ((0, d_pad - D_in), (0, h_pad - H)))
        b_enc = jnp.pad(b_enc, ((0, 0), (0, h_pad - H)))
        w_dec_t = jnp.pad(w_dec_t, ((0, h_pad - H), (0, d_pad - D_in)))
        in_bias = jnp.pad(in_bias, ((0, 0), (0, d_pad - D_in)))

    grid = (b_pad // tb, h_pad // th)

    y, acts = pl.pallas_call(
        autoencoder_kernel,
        out_shape=(
            jax.ShapeDtypeStruct((b_pad, d_pad), x.dtype),
            jax.ShapeDtypeStruct((b_pad, h_pad), x.dtype),
        ),
        grid_spec=pltpu.PrefetchScalarGridSpec(
            num_scalar_prefetch=0,
            grid=grid,
            in_specs=[
                pl.BlockSpec((tb, d_pad), lambda i, h: (i, 0)),   # x tile
                pl.BlockSpec((d_pad, th), lambda i, h: (0, h)),   # W_enc^T slab
                pl.BlockSpec((1, th), lambda i, h: (0, h)),       # folded b_enc slab
                pl.BlockSpec((th, d_pad), lambda i, h: (h, 0)),   # W_dec^T slab
                pl.BlockSpec((1, d_pad), lambda i, h: (0, 0)),    # input_bias
            ],
            out_specs=[
                pl.BlockSpec((tb, d_pad), lambda i, h: (i, 0)),   # y (resident over h)
                pl.BlockSpec((tb, th), lambda i, h: (i, h)),      # acts
            ],
            scratch_shapes=[pltpu.VMEM((tb, d_pad), jnp.float32)],
        ),
        compiler_params=pltpu.CompilerParams(
            # batch axis parallel (shards across the 2 TCs on v7x),
            # hidden axis is the y-reduction -> arbitrary and last.
            dimension_semantics=("parallel", "arbitrary"),
            vmem_limit_bytes=64 * 1024 * 1024,
        ),
    )(x, w_enc_t, b_enc, w_dec_t, in_bias)

    if b_pad != B or d_pad != D_in:
        y = y[:B, :D_in]
    if b_pad != B or h_pad != H:
        acts = acts[:B, :H]
    return y, acts


def reference_forward(x, w_enc, b_enc, w_dec, input_bias):
    """Pure-JAX reference mirroring the PyTorch module (unfolded params)."""
    h = (x - input_bias) @ w_enc.T + b_enc
    acts = jnp.maximum(h, 0.0)
    y = acts @ w_dec.T + input_bias
    return y, acts


if __name__ == "__main__":
    def run_case(B, D_in, H, seed, **tile_kwargs):
        key = jax.random.PRNGKey(seed)
        kx, kwe, kbe, kwd, kib = jax.random.split(key, 5)

        x = jax.random.normal(kx, (B, D_in), dtype=jnp.float32)
        w_enc = jax.random.normal(kwe, (H, D_in), dtype=jnp.float32) * 0.05
        b_enc = jax.random.normal(kbe, (H,), dtype=jnp.float32) * 0.01
        w_dec = jax.random.normal(kwd, (D_in, H), dtype=jnp.float32) * 0.05
        input_bias = jax.random.normal(kib, (D_in,), dtype=jnp.float32) * 0.01

        params = prepare_params(w_enc, b_enc, w_dec, input_bias)  # one-time prep
        y, acts = autoencoder_forward(x, params, **tile_kwargs)
        jax.block_until_ready((y, acts))

        y_ref, acts_ref = reference_forward(x, w_enc, b_enc, w_dec, input_bias)
        assert y.shape == y_ref.shape and acts.shape == acts_ref.shape
        assert jnp.allclose(y, y_ref, atol=1e-4, rtol=1e-3), (
            f"y mismatch, max abs err {jnp.max(jnp.abs(y - y_ref))}")
        assert jnp.allclose(acts, acts_ref, atol=1e-4, rtol=1e-3), (
            f"acts mismatch, max abs err {jnp.max(jnp.abs(acts - acts_ref))}")

    # Exercise both grid axes: 2 batch tiles x 2 hidden tiles (default tiles).
    run_case(B=256, D_in=128, H=1024, seed=0)
    # Toy / ragged case (original module sizes) exercising B/H padding.
    run_case(B=16, D_in=128, H=64, seed=1)
    # Ragged input-dim case exercising D_in lane padding.
    run_case(B=16, D_in=96, H=64, seed=2)

    # TODO(synk): AutoEncoder.loss (MSE + L1) is not part of forward; compute it
    # in plain JAX from (y, acts) if needed.
    print("KERNEL_OK")
</pallas_src>

<mosaic_0001>
module attributes {stable_mosaic.version = 11 : i64} {
  func.func @autoencoder_kernel(%arg0: i32, %arg1: i32, %arg2: memref<128x128xf32, #tpu.memory_space<vmem>>, %arg3: memref<128x512xf32, #tpu.memory_space<vmem>>, %arg4: memref<1x512xf32, #tpu.memory_space<vmem>>, %arg5: memref<512x128xf32, #tpu.memory_space<vmem>>, %arg6: memref<1x128xf32, #tpu.memory_space<vmem>>, %arg7: memref<128x128xf32, #tpu.memory_space<vmem>>, %arg8: memref<128x512xf32, #tpu.memory_space<vmem>>, %arg9: memref<128x128xf32, #tpu.memory_space<vmem>>) attributes {dimension_semantics = [#tpu.dimension_semantics<parallel>, #tpu.dimension_semantics<arbitrary>], iteration_bounds = array<i64: 2, 2>, scalar_prefetch = 0 : i64, scratch_operands = 1 : i64, tpu.core_type = #tpu.core_type<tc>, window_params = [{transform_indices = @transform_0, window_bounds = array<i64: 128, 128>}, {transform_indices = @transform_1, window_bounds = array<i64: 128, 512>}, {transform_indices = @transform_2, window_bounds = array<i64: 1, 512>}, {transform_indices = @transform_3, window_bounds = array<i64: 512, 128>}, {pipeline_mode = #tpu.pipeline_mode<synchronous>, transform_indices = @transform_4, window_bounds = array<i64: 1, 128>}, {transform_indices = @transform_5, window_bounds = array<i64: 128, 128>}, {transform_indices = @transform_6, window_bounds = array<i64: 128, 512>}]} {
    %c0_i32 = arith.constant 0 : i32
    %0 = arith.cmpi eq, %arg1, %c0_i32 : i32
    %1 = arith.extui %0 : i1 to i32
    %c0_i32_0 = arith.constant 0 : i32
    %2 = arith.cmpi ne, %1, %c0_i32_0 : i32
    scf.if %2 {
      %cst_17 = arith.constant 0.000000e+00 : f32
      %20 = vector.broadcast %cst_17 : f32 to vector<128x128xf32>
      %c0_18 = arith.constant 0 : index
      %c0_19 = arith.constant 0 : index
      %21 = vector.load %arg9[%c0_18, %c0_19] : memref<128x128xf32, #tpu.memory_space<vmem>>, vector<128x128xf32>
      tpu.vector_store %arg9[%c0_18, %c0_19], %20 {strides = array<i32>} : memref<128x128xf32, #tpu.memory_space<vmem>>, vector<128x128xf32>,
    } else {
    }
    %c0 = arith.constant 0 : index
    %c0_1 = arith.constant 0 : index
    %3 = vector.load %arg2[%c0, %c0_1] : memref<128x128xf32, #tpu.memory_space<vmem>>, vector<128x128xf32>
    %c0_2 = arith.constant 0 : index
    %c0_3 = arith.constant 0 : index
    %4 = vector.load %arg3[%c0_2, %c0_3] : memref<128x512xf32, #tpu.memory_space<vmem>>, vector<128x512xf32>
    %cst = arith.constant dense<0.000000e+00> : vector<128x512xf32>
    %5 = tpu.matmul %3, %4, %cst {dimension_numbers = #tpu.dot_dimension_numbers<[1], [0], [0], [1], [0, 0, 1, 1], [], []>} : vector<128x128xf32>, vector<128x512xf32>, vector<128x512xf32> -> vector<128x512xf32>
    %c0_4 = arith.constant 0 : index
    %c0_5 = arith.constant 0 : index
    %6 = vector.load %arg4[%c0_4, %c0_5] : memref<1x512xf32, #tpu.memory_space<vmem>>, vector<1x512xf32>
    %7 = vector.broadcast %6 : vector<1x512xf32> to vector<128x512xf32>
    %8 = arith.addf %5, %7 : vector<128x512xf32>
    %cst_6 = arith.constant 0.000000e+00 : f32
    %9 = vector.broadcast %cst_6 : f32 to vector<128x512xf32>
    %10 = arith.maximumf %8, %9 : vector<128x512xf32>
    %c0_7 = arith.constant 0 : index
    %c0_8 = arith.constant 0 : index
    %11 = vector.load %arg8[%c0_7, %c0_8] : memref<128x512xf32, #tpu.memory_space<vmem>>, vector<128x512xf32>
    tpu.vector_store %arg8[%c0_7, %c0_8], %10 {strides = array<i32>} : memref<128x512xf32, #tpu.memory_space<vmem>>, vector<128x512xf32>,
    %c0_9 = arith.constant 0 : index
    %c0_10 = arith.constant 0 : index
    %12 = vector.load %arg9[%c0_9, %c0_10] : memref<128x128xf32, #tpu.memory_space<vmem>>, vector<128x128xf32>
    %c0_11 = arith.constant 0 : index
    %c0_12 = arith.constant 0 : index
    %13 = vector.load %arg5[%c0_11, %c0_12] : memref<512x128xf32, #tpu.memory_space<vmem>>, vector<512x128xf32>
    %cst_13 = arith.constant dense<0.000000e+00> : vector<128x128xf32>
    %14 = tpu.matmul %10, %13, %cst_13 {dimension_numbers = #tpu.dot_dimension_numbers<[1], [0], [0], [1], [0, 0, 1, 1], [], []>} : vector<128x512xf32>, vector<512x128xf32>, vector<128x128xf32> -> vector<128x128xf32>
    %15 = arith.addf %12, %14 : vector<128x128xf32>
    %c0_14 = arith.constant 0 : index
    %c0_15 = arith.constant 0 : index
    %16 = vector.load %arg9[%c0_14, %c0_15] : memref<128x128xf32, #tpu.memory_space<vmem>>, vector<128x128xf32>
    tpu.vector_store %arg9[%c0_14, %c0_15], %15 {strides = array<i32>} : memref<128x128xf32, #tpu.memory_space<vmem>>, vector<128x128xf32>,
    %c1_i32 = arith.constant 1 : i32
    %17 = arith.cmpi eq, %arg1, %c1_i32 : i32
    %18 = arith.extui %17 : i1 to i32
    %c0_i32_16 = arith.constant 0 : i32
    %19 = arith.cmpi ne, %18, %c0_i32_16 : i32
    scf.if %19 {
      %c0_17 = arith.constant 0 : index
      %c0_18 = arith.constant 0 : index
      %20 = vector.load %arg9[%c0_17, %c0_18] : memref<128x128xf32, #tpu.memory_space<vmem>>, vector<128x128xf32>
      %c0_19 = arith.constant 0 : index
      %c0_20 = arith.constant 0 : index
      %21 = vector.load %arg6[%c0_19, %c0_20] : memref<1x128xf32, #tpu.memory_space<vmem>>, vector<1x128xf32>
      %22 = vector.broadcast %21 : vector<1x128xf32> to vector<128x128xf32>
      %23 = arith.addf %20, %22 : vector<128x128xf32>
      %c0_21 = arith.constant 0 : index
      %c0_22 = arith.constant 0 : index
      %24 = vector.load %arg7[%c0_21, %c0_22] : memref<128x128xf32, #tpu.memory_space<vmem>>, vector<128x128xf32>
      tpu.vector_store %arg7[%c0_21, %c0_22], %23 {strides = array<i32>} : memref<128x128xf32, #tpu.memory_space<vmem>>, vector<128x128xf32>,
    } else {
    }
    return
  }
  func.func @transform_0(%arg0: i32, %arg1: i32) -> (i32, i32) {
    %c0_i32 = arith.constant 0 : i32
    %c0_i32_0 = arith.constant 0 : i32
    return %arg0, %c0_i32 : i32, i32
  }
  func.func @transform_1(%arg0: i32, %arg1: i32) -> (i32, i32) {
    %c0_i32 = arith.constant 0 : i32
    %c0_i32_0 = arith.constant 0 : i32
    return %c0_i32, %arg1 : i32, i32
  }
  func.func @transform_2(%arg0: i32, %arg1: i32) -> (i32, i32) {
    %c0_i32 = arith.constant 0 : i32
    %c0_i32_0 = arith.constant 0 : i32
    return %c0_i32, %arg1 : i32, i32
  }
  func.func @transform_3(%arg0: i32, %arg1: i32) -> (i32, i32) {
    %c0_i32 = arith.constant 0 : i32
    %c0_i32_0 = arith.constant 0 : i32
    return %arg1, %c0_i32 : i32, i32
  }
  func.func @transform_4(%arg0: i32, %arg1: i32) -> (i32, i32) {
    %c0_i32 = arith.constant 0 : i32
    %c0_i32_0 = arith.constant 0 : i32
    %c0_i32_1 = arith.constant 0 : i32
    return %c0_i32, %c0_i32_0 : i32, i32
  }
  func.func @transform_5(%arg0: i32, %arg1: i32) -> (i32, i32) {
    %c0_i32 = arith.constant 0 : i32
    %c0_i32_0 = arith.constant 0 : i32
    return %arg0, %c0_i32 : i32, i32
  }
  func.func @transform_6(%arg0: i32, %arg1: i32) -> (i32, i32) {
    %c0_i32 = arith.constant 0 : i32
    return %arg0, %arg1 : i32, i32
  }
}

</mosaic_0001>

<bundles_post_ra>
// kernel: autoencoder_forward.1
= control target key start
LH: loop header
LB: loop body
LE: loop exit
PB: predicated region body
PF: predicated region fallthrough
CT: control target
= control target key end

     0   :  { %s2770_s0 = inlined_call_operand.hbm [shape: f32[256,128], index: 0, kind: input, shape index: {}]   ;;  %s2771_s1 = inlined_call_operand.hbm [shape: f32[128,1024], index: 1, kind: input, shape index: {}]   ;;  %s2772_s2 = inlined_call_operand.hbm [shape: f32[1,1024], index: 2, kind: input, shape index: {}]   ;;  %s2773_s3 = inlined_call_operand.hbm [shape: f32[1024,128], index: 3, kind: input, shape index: {}]   ;;  %s2774_s4 = inlined_call_operand.vmem [shape: f32[1,128], index: 4, kind: input, shape index: {}]   ;;  %s2775_s5 = inlined_call_operand.hbm [shape: f32[256,128], index: 5, kind: output, shape index: {0}]   ;;  %s2776_s6 = inlined_call_operand.hbm [shape: f32[256,1024], index: 6, kind: output, shape index: {1}]  }
   0x1   :  { %2797 = sst [smem:[#allocation37_spill]] %s2770_s0 }
   0x2   :  { %2798 = sst [smem:[#allocation38_spill]] %s2771_s1 }
   0x3   :  { %2799 = sst [smem:[#allocation39_spill]] %s2774_s4 }
   0x4   :  { %2800 = sst [smem:[#allocation40_spill]] %s2775_s5 }
   0x5   :  { %2801 = sst [smem:[#allocation41_spill]] %s2776_s6 }
   0x6   :  { %12 = vsyncpa [#allocation4], 0 }
   0x7   :  { %14 = vsyncpa [#allocation4 + $0x1], 0 }
   0x8   :  { %15 = vsyncpa [#allocation7], 0 }
   0x9   :  { %17 = vsyncpa [#allocation7 + $0x1], 0 }
   0xa   :  { %18 = vsyncpa [#allocation10], 0 }
   0xb   :  { %20 = vsyncpa [#allocation10 + $0x1], 0 }
   0xc   :  { %21 = vsyncpa [#allocation5], 0 }
   0xd   :  { %23 = vsyncpa [#allocation5 + $0x1], 0 }
   0xe   :  { %24 = vsyncpa [#allocation13], 0 }
   0xf   :  { %26 = vsyncpa [#allocation13 + $0x1], 0  ;;  %s2128_s21 = smov 0   ;;  %s2130_s22 = smov 0  }
  0x10   :  { %s2132_s23 = smov 0   ;;  %s2134_s24 = smov 0  }
  0x11   :  { %s2136_s25 = smov 0   ;;  %s2138_s26 = smov 0  }
  0x12   :  { %s2140_s27 = smov 0   ;;  %s2142_s28 = smov 0  }
  0x13   :  { %s2144_s29 = smov 0   ;;  %s2146_s30 = smov 0  }
  0x14   :  { %s2148_s7 = smov 0   ;;  %s2150_s8 = smov 0  }
  0x15   :  { %s2152_s9 = smov 0   ;;  %s2154_s10 = smov 0  }
  0x16 LB: > { %2802 = sst [smem:[#allocation19_spill]] %s2028_s21  ;;  %p59_p0 = scmp.eq.s32.totalorder %s2080_s10, 0  ;;  %s2080_s10 = sphi %s2154_s10, %s32_s10   ;;  %s2076_s9 = sphi %s2152_s9, %s2860_s9   ;;  %s2072_s8 = sphi %s2150_s8, %s2870_s8   ;;  %s2068_s7 = sphi %s2148_s7, %s2858_s7   ;;  %s2064_s30 = sphi %s2146_s30, %s2869_s30   ;;  %s2060_s29 = sphi %s2144_s29, %s2857_s29   ;;  %s2056_s28 = sphi %s2142_s28, %s2868_s28   ;;  %s2052_s27 = sphi %s2140_s27, %s2867_s27   ;;  %s2048_s26 = sphi %s2138_s26, %s2866_s26   ;;  %s2044_s25 = sphi %s2136_s25, %s2865_s25   ;;  %s2040_s24 = sphi %s2134_s24, %s2864_s24   ;;  %s2036_s23 = sphi %s2132_s23, %s2853_s23   ;;  %s2032_s22 = sphi %s2130_s22, %s2863_s22   ;;  %s2028_s21 = sphi %s2128_s21, %s2862_s21  }
  0x17   : > { %2803 = sst [smem:[#allocation20_spill]] %s2036_s23  ;;  %p84_p1 = scmp.ne.s32.totalorder %s2048_s26, %s2044_s25 }
  0x18   : > { %2804 = sst [smem:[#allocation21_spill]] %s2048_s26  ;;  %p90_p2 = scmp.ne.s32.totalorder %s2044_s25, %s2040_s24 }
  0x19   : > { %2805 = sst [smem:[#allocation22_spill]] %s2052_s27  ;;  %p2781_p3 = scmp.lt.s32.totalorder %s2080_s10, 4 }
  0x1a   : > { %2806 = sst [smem:[#allocation23_spill]] %s2060_s29  ;;  %p86_p4 = por %p84_p1, %p59_p0 }
  0x1b   : > { %2807 = sst [smem:[#allocation24_spill]] %s2064_s30  ;;  %s266_s12 = sand.u32 1, %s2080_s10  }
  0x1c   : > { %2808 = sst [smem:[#allocation25_spill]] %s2068_s7  ;;  %s2209_s13 = sand.u32 1, %s2048_s26  }
  0x1d   : > { %2809 = sst [smem:[#allocation26_spill]] %s2076_s9  ;;  %s2778_s14 = sshll.u32 %s2209_s13, 9 }
  0x1e   : > { %2810 = sst [smem:[#allocation27_spill]] %s2080_s10  ;;  %s1612_s15 = sshll.u32 %s2072_s8, 5 }
  0x1f   : > { %s2811_s1 = sld [smem:[#allocation38_spill]]  ;;  %s270_s20 = scalar_lea.vmem [#allocation6], %s2778_s14 }
  0x20   : > { %s278_s11 = sshll.u32 %s270_s20, 4  ;;  %p2220_p5 = pnand %p2781_p3, %p86_p4  ;;  %s279_s11 = int_to_ptr.vmem [resolvable:$true] %s278_s11 }
  0x21   : > { %p1592_p6 = scmp.ge.s32.totalorder %s2080_s10, 1  ;;  %s2082_s16 = smov 1024  }
  0x22   : > { %s2083_s17 = smov 512   ;;  %p327_p7 = scmp.lt.s32.totalorder %s2080_s10, 5 }
  0x23   : > { %s1578_s14 = sadd.s32 4294967294, %s2080_s10   ;;  %s44_s5 = sadd.s32 1, %s2076_s9 }
  0x24   : > { %p2231_p8 = pnand %p1592_p6, %p327_p7  ;;  %p58_p10 = scmp.ne.s32.totalorder %s2060_s29, %s2056_s28 }
  0x25   : > { %s275_s18 = scalar_lea.hbm %s2811_s1, %s1612_s15  ;;  %s2225_s15 = scalar_lea.sflag [#allocation7], %s266_s12 }
  0x26   : > { %s276_s19 = sshll.u32 %s275_s18, 4  ;;  %s2084_s18 = smov 32   ;;  %s277_s19 = int_to_ptr.hbm [resolvable:$true] %s276_s19 }
  0x27   : > { %1634 = dma.hbm_to_vmem [thread:$0]  (!%p2220_p5), %s277_s19, 8192, %s279_s11, %s2225_s15, %s2082_s16, %s2083_s17, %s2084_s18  }
  0x28   : > { %s2813_s20 = scalar_select %p2231_p8, 1, 0 }
  0x29   : > { %s2236_s12 = sadd.s32 4294967295, %s2080_s10   ;;  %s41_s1 = sadd.s32 1, %s2072_s8 }
  0x2a   : > { %2814 = sst [smem:[#allocation28_spill]] %s2813_s20  ;;  %p42_p9 = scmp.ge.s32.totalorder %s41_s1, 2 }
  0x2b   : > { %s51_s11 = sadd.s32 1, %s2060_s29  ;;  %p64_p11 = scmp.ne.s32.totalorder %s2056_s28, %s2052_s27 }
  0x2c   : > { %s2872_s1 = smov (%p42_p9, %s41_s1), 0  ;;  %s2874_s5 = smov (!%p42_p9, %s44_s5), %s2076_s9 }
  0x2d   : > { %2815 = sst [smem:[#allocation29_spill]] %s2872_s1  ;;  %p2254_p12 = por %p59_p0, %p58_p10 }
  0x2e   : > { %p65_p13 = scmp.eq.s32.totalorder %s2236_s12, 0  ;;  %p46_p1 = scmp.ge.s32.totalorder %s2874_s5, 2 }
  0x2f   : > { %s74_s16 = ssub.s32 %s2072_s8, %s2872_s1  ;;  %s2820_s18 = sadd.s32 1, %s2048_s26 }
  0x30   : > { %p2264_p4 = por %p65_p13, %p64_p11  ;;  %p75_p6 = scmp.eq.s32.totalorder %s74_s16, 0 }
  0x31   : > { %s2876_s5 = smov (%p46_p1, %s2874_s5), 0  ;;  %p2280_p0 = por %p90_p2, %p65_p13 }
  0x32   : > { %s2817_s17 = scalar_select %p2264_p4, 1, 0 }
  0x33   : > { %2819 = sst [smem:[#allocation31_spill]] %s2876_s5  ;;  %s48_s4 = ssub.s32 %s2076_s9, %s2876_s5 }
  0x34   : > { %2818 = sst [smem:[#allocation30_spill]] %s2817_s17  ;;  %p49_p7 = scmp.eq.s32.totalorder %s48_s4, 0 }
  0x35   : > { %s2273_s7 = scalar_select %p75_p6, %s2048_s26, %s2820_s18  }
  0x36   : > { %s2822_s1 = scalar_select %p2280_p0, 1, 0 }
  0x37   : > { %2821 = sst [smem:[#allocation32_spill]] %s2273_s7  ;;  %p187_p9 = scmp.eq.s32.totalorder %s2236_s12, 3 }
  0x38   : > { %p193_p3 = scmp.eq.s32.totalorder %s1578_s14, 3  ;;  %s201_s30 = sor.u32 %s74_s16, %s48_s4 }
  0x39   : > { %s2286_s17 = scalar_select %p49_p7, %s2060_s29, %s51_s11  }
  0x3a   : > { %p2291_p1 = por %p187_p9, %p58_p10  ;;  %p2298_p6 = por %p193_p3, %p64_p11 }
  0x3b   : > { %2823 = sst [smem:[#allocation33_spill]] %s2286_s17  ;;  %p202_p2 = scmp.eq.s32.totalorder %s201_s30, 0 }
  0x3c   : > { %s2825_s24 = scalar_select %p2298_p6, 1, 0 }
  0x3d   : > { %s204_s18 = sadd.s32 1, %s2036_s23  ;;  %p214_p13 = scmp.ne.s32.totalorder %s2036_s23, %s2032_s22 }
  0x3e   : > { %2826 = sst [smem:[#allocation34_spill]] %s2825_s24  ;;  %p220_p0 = scmp.ne.s32.totalorder %s2032_s22, %s2028_s21 }
  0x3f   : > { %s2308_s4 = scalar_select %p202_p2, %s2036_s23, %s204_s18  }
  0x40   : > { %p2310_p7 = por %p214_p13, %p187_p9  ;;  %p2314_p10 = por %p220_p0, %p193_p3 }
  0x41   : > { %2827 = sst [smem:[#allocation35_spill]] %s2308_s4  ;;  %s244_s16 = sand.u32 1, %s2060_s29  }
  0x42   : > { %s2829_s11 = scalar_select %p2314_p10, 1, 0 }
  0x43   : > { %s1611_s5 = sshll.u32 %s2076_s9, 7  ;;  %s1581_s30 = sshll.u32 %s244_s16, 7 }
  0x44   : > { %2830 = sst [smem:[#allocation36_spill]] %s2829_s11  ;;  %s248_s21 = scalar_lea.vmem [#allocation3], %s1581_s30 }
  0x45   : > { %s2831_s0 = sld [smem:[#allocation37_spill]]  ;;  %s256_s18 = sshll.u32 %s248_s21, 4  ;;  %s257_s18 = int_to_ptr.vmem [resolvable:$true] %s256_s18 }
  0x46   : > { %p2832_p3 = scmp.lt.s32.totalorder %s2080_s10, 4  ;;  %s1587_s4 = sshll.u32 %s2209_s13, 2 }
  0x47   : > { %s245_s29 = scalar_lea.sflag [#allocation4], %s244_s16  ;;  %s2085_s9 = smov 128  }
  0x48   : > { %p1629_p11 = pnand %p2832_p3, %p2254_p12  ;;  %s2086_s23 = smov 8  }
  0x49   : > { %s1588_s7 = sshll.u32 %s2072_s8, 2  ;;  %s1613_s19 = sshll.u32 %s2072_s8, 9 }
  0x4a   : > { %s296_s30 = scalar_lea.hbm %s2772_s2, %s1588_s7  ;;  %s2833_s11 = sshll.u32 %s2209_s13, 9 }
  0x4b   : > { %s253_s26 = scalar_lea.hbm %s2831_s0, %s1611_s5  ;;  %s292_s5 = scalar_lea.vmem [#allocation8], %s1587_s4 }
  0x4c   : > { %s254_s24 = sshll.u32 %s253_s26, 4  ;;  %s300_s26 = sshll.u32 %s292_s5, 4  ;;  %s255_s24 = int_to_ptr.hbm [resolvable:$true] %s254_s24  ;;  %s301_s26 = int_to_ptr.vmem [resolvable:$true] %s300_s26 }
  0x4d   : > { %1631 = dma.hbm_to_vmem [thread:$0]  (!%p1629_p11), %s255_s24, 2048, %s257_s18, %s245_s29, %s2085_s9, %s2085_s9, %s2086_s23  }
  0x4e   : > { %s298_s0 = sshll.u32 %s296_s30, 4  ;;  %s311_s16 = scalar_lea.vmem [#allocation9], %s2833_s11  ;;  %s299_s0 = int_to_ptr.hbm [resolvable:$true] %s298_s0 }
  0x4f   : > { %1637 = dma.hbm_to_vmem [thread:$0]  (!%p2220_p5), %s299_s0, 64, %s301_s26, %s2225_s15  }
  0x50   : > { %s319_s27 = sshll.u32 %s311_s16, 4  ;;  %s316_s24 = scalar_lea.hbm %s2773_s3, %s1613_s19  ;;  %s320_s27 = int_to_ptr.vmem [resolvable:$true] %s319_s27 }
  0x51   : > { %s317_s4 = sshll.u32 %s316_s24, 4  ;;  %s308_s18 = scalar_lea.sflag [#allocation10], %s2209_s13  ;;  %s318_s4 = int_to_ptr.hbm [resolvable:$true] %s317_s4 }
  0x52   : > { %1640 = dma.hbm_to_vmem [thread:$0]  (!%p2220_p5), %s318_s4, 8192, %s320_s27, %s308_s18, %s2085_s9, %s2085_s9, %s2086_s23  }
  0x53   : > { %331 = sbr.rel (%p2231_p8) target bundleno = 620 (0x26c), region = 40  ;;  %s2347_s0 = sand.u32 (!%p2231_p8), 1, %s2056_s28  }
  0x54   : > { %s1593_s15 = sshll.u32 (!%p2231_p8), %s2347_s0, 7  ;;  %s334_s11 = scalar_lea.sflag (!%p2231_p8), [#allocation4], %s2347_s0 }
  0x55   : > { %s2351_s26 = scalar_lea.vmem (!%p2231_p8), [#allocation3], %s1593_s15 }
  0x58   : > { %2007 = dma.done.wait (%p2264_p4), %s334_s11, 2048  }
  0x59   : > { %2009 = vsyncadd (%p2264_p4), %s334_s11, 4294965248  ;;  %s343_s6 = sand.u32 1, %s2236_s12   ;;  %s345_s23 = sand.u32 1, %s2044_s25  }
  0x5a   : > { %s1594_s27 = sshll.u32 %s345_s23, 9  ;;  %s344_s9 = scalar_lea.sflag [#allocation7], %s343_s6 }
  0x5b   : > { %s2359_s10 = scalar_lea.vmem [#allocation6], %s1594_s27  ;;  %p2836_p5 = scmp.ne.s32.totalorder %s2822_s1, 0 }
  0x5d   : > { %2011 = dma.done.wait (%p2836_p5), %s344_s9, 8256  }
  0x5e   : > { %2013 = vsyncadd (%p2836_p5), %s344_s9, 4294959040  ;;  %s1595_s13 = sshll.u32 %s345_s23, 2  ;;  %s364_s17 = scalar_lea.sflag [#allocation10], %s345_s23 }
  0x5f   : > { %s2365_s21 = scalar_lea.vmem [#allocation8], %s1595_s13  ;;  %s2367_s30 = scalar_lea.vmem [#allocation9], %s1594_s27 }
  0x60   : > { %2015 = dma.done.wait (%p2836_p5), %s364_s17, 8192  }
  0x61   : > { %2017 = vsyncadd (%p2836_p5), %s364_s17, 4294959104  ;;  %s414_s12 = sand.u32 1, %s2032_s22   ;;  %s2376_s16 = scalar_lea.vmem [#allocation11], %s1593_s15 }
  0x62   : > { %s1598_s19 = sshll.u32 %s414_s12, 9  ;;  %s2837_s24 = sld [smem:[#allocation24_spill]] }
  0x63   : > { %s2378_s29 = scalar_lea.vmem [#allocation12], %s1598_s19 }
  0x68   : > { %p1599_p8 = scmp.ne.s32.totalorder %s2837_s24, 0 }
  0x6a   : > { %427 = sbr.rel (%p1599_p8) target bundleno = 128 (0x80), region = 60 }
  0x6f   : > { %v2087_v0 = vmov 0.0  }
  0x70   : > { %428 = vst [vmem:[#allocation2 + $0x30] sm:$0xff] %v2087_v0 }
  0x71   : > { %429 = vst [vmem:[#allocation2] sm:$0xff] %v2087_v0 }
  0x72   : > { %430 = vst [vmem:[#allocation2 + $0x58] sm:$0xff] %v2087_v0 }
  0x73   : > { %431 = vst [vmem:[#allocation2 + $0x18] sm:$0xff] %v2087_v0 }
  0x74   : > { %432 = vst [vmem:[#allocation2 + $0x50] sm:$0xff] %v2087_v0 }
  0x75   : > { %433 = vst [vmem:[#allocation2 + $0x68] sm:$0xff] %v2087_v0 }
  0x76   : > { %434 = vst [vmem:[#allocation2 + $0x8] sm:$0xff] %v2087_v0 }
  0x77   : > { %435 = vst [vmem:[#allocation2 + $0x48] sm:$0xff] %v2087_v0 }
  0x78   : > { %436 = vst [vmem:[#allocation2 + $0x40] sm:$0xff] %v2087_v0 }
  0x79   : > { %437 = vst [vmem:[#allocation2 + $0x20] sm:$0xff] %v2087_v0 }
  0x7a   : > { %438 = vst [vmem:[#allocation2 + $0x10] sm:$0xff] %v2087_v0 }
  0x7b   : > { %439 = vst [vmem:[#allocation2 + $0x38] sm:$0xff] %v2087_v0 }
  0x7c   : > { %440 = vst [vmem:[#allocation2 + $0x60] sm:$0xff] %v2087_v0 }
  0x7d   : > { %441 = vst [vmem:[#allocation2 + $0x70] sm:$0xff] %v2087_v0 }
  0x7e   : > { %442 = vst [vmem:[#allocation2 + $0x78] sm:$0xff] %v2087_v0 }
  0x7f   : > { %443 = vst [vmem:[#allocation2 + $0x28] sm:$0xff] %v2087_v0 }
  0x80 PF: > { %v522_v1 = vld [vmem:[%s2359_s10 + $0x1f0] sm:$0xff]  ;;  %v523_v3 = vld [vmem:[%s2359_s10 + $0x1f8] sm:$0xff]  ;;  %v520_v8 = vld [vmem:[%s2359_s10 + $0x1e0] sm:$0xff]  ;;  %s2838_s1 = sld [smem:[#allocation24_spill]] }
  0x81   : > { %v518_v2 = vld [vmem:[%s2359_s10 + $0x1d0] sm:$0xff]  ;;  %664 = vmatpush.msra.mxu2 %v522_v1  ;;  %729 = vmatpush.msra.mxu3 %v523_v3  ;;  %v519_v4 = vld [vmem:[%s2359_s10 + $0x1d8] sm:$0xff]  ;;  %v521_v9 = vld [vmem:[%s2359_s10 + $0x1e8] sm:$0xff] }
  0x82   : > { %v514_v5 = vld [vmem:[%s2359_s10 + $0x1b0] sm:$0xff]  ;;  %v515_v6 = vld [vmem:[%s2359_s10 + $0x1b8] sm:$0xff]  ;;  %534 = vmatpush.msra.mxu0 %v520_v8  ;;  %599 = vmatpush.msra.mxu1 %v521_v9  ;;  %v516_v11 = vld [vmem:[%s2359_s10 + $0x1c0] sm:$0xff] }
  0x83   : > { %665 = vmatpush.msra.mxu2 %v518_v2  ;;  %730 = vmatpush.msra.mxu3 %v519_v4  ;;  %v510_v7 = vld [vmem:[%s2359_s10 + $0x190] sm:$0xff]  ;;  %v511_v10 = vld [vmem:[%s2359_s10 + $0x198] sm:$0xff]  ;;  %v517_v12 = vld [vmem:[%s2359_s10 + $0x1c8] sm:$0xff] }
  0x84   : > { %v512_v13 = vld [vmem:[%s2359_s10 + $0x1a0] sm:$0xff]  ;;  %v506_v14 = vld [vmem:[%s2359_s10 + $0x170] sm:$0xff]  ;;  %v507_v15 = vld [vmem:[%s2359_s10 + $0x178] sm:$0xff]  ;;  %535 = vmatpush.msra.mxu0 %v516_v11  ;;  %600 = vmatpush.msra.mxu1 %v517_v12 }
  0x85   : > { %666 = vmatpush.msra.mxu2 %v514_v5  ;;  %731 = vmatpush.msra.mxu3 %v515_v6  ;;  %v513_v16 = vld [vmem:[%s2359_s10 + $0x1a8] sm:$0xff]  ;;  %v508_v17 = vld [vmem:[%s2359_s10 + $0x180] sm:$0xff]  ;;  %v502_v19 = vld [vmem:[%s2359_s10 + $0x150] sm:$0xff] }
  0x86   : > { %v509_v18 = vld [vmem:[%s2359_s10 + $0x188] sm:$0xff]  ;;  %v503_v20 = vld [vmem:[%s2359_s10 + $0x158] sm:$0xff]  ;;  %536 = vmatpush.msra.mxu0 %v512_v13  ;;  %601 = vmatpush.msra.mxu1 %v513_v16  ;;  %v504_v21 = vld [vmem:[%s2359_s10 + $0x160] sm:$0xff]  ;;  %p1600_p12 = scmp.ne.s32.totalorder %s2838_s1, 1 }
  0x87   : > { %667 = vmatpush.msra.mxu2 %v510_v7  ;;  %732 = vmatpush.msra.mxu3 %v511_v10  ;;  %v505_v22 = vld [vmem:[%s2359_s10 + $0x168] sm:$0xff]  ;;  %v498_v23 = vld [vmem:[%s2359_s10 + $0x130] sm:$0xff]  ;;  %v499_v24 = vld [vmem:[%s2359_s10 + $0x138] sm:$0xff]  ;;  %s2839_s7 = sld [smem:[#allocation39_spill]] (!%p1600_p12) }
  0x88   : > { %537 = vmatpush.msra.mxu0 %v508_v17  ;;  %602 = vmatpush.msra.mxu1 %v509_v18  ;;  %v500_v25 = vld [vmem:[%s2359_s10 + $0x140] sm:$0xff]  ;;  %v501_v26 = vld [vmem:[%s2359_s10 + $0x148] sm:$0xff]  ;;  %v494_v27 = vld [vmem:[%s2359_s10 + $0x110] sm:$0xff] }
  0x89   : > { %668 = vmatpush.msra.mxu2 %v506_v14  ;;  %733 = vmatpush.msra.mxu3 %v507_v15  ;;  %v495_v28 = vld [vmem:[%s2359_s10 + $0x118] sm:$0xff]  ;;  %v496_v29 = vld [vmem:[%s2359_s10 + $0x120] sm:$0xff]  ;;  %v497_v30 = vld [vmem:[%s2359_s10 + $0x128] sm:$0xff] }
  0x8a   : > { %538 = vmatpush.msra.mxu0 %v504_v21  ;;  %603 = vmatpush.msra.mxu1 %v505_v22  ;;  %v490_v31 = vld [vmem:[%s2359_s10 + $0xf0] sm:$0xff]  ;;  %v491_v32 = vld [vmem:[%s2359_s10 + $0xf8] sm:$0xff]  ;;  %v492_v33 = vld [vmem:[%s2359_s10 + $0x100] sm:$0xff] }
  0x8b   : > { %669 = vmatpush.msra.mxu2 %v502_v19  ;;  %734 = vmatpush.msra.mxu3 %v503_v20  ;;  %v493_v34 = vld [vmem:[%s2359_s10 + $0x108] sm:$0xff]  ;;  %v486_v35 = vld [vmem:[%s2359_s10 + $0xd0] sm:$0xff]  ;;  %v487_v36 = vld [vmem:[%s2359_s10 + $0xd8] sm:$0xff] }
  0x8c   : > { %539 = vmatpush.msra.mxu0 %v500_v25  ;;  %604 = vmatpush.msra.mxu1 %v501_v26  ;;  %v488_v37 = vld [vmem:[%s2359_s10 + $0xe0] sm:$0xff]  ;;  %v489_v38 = vld [vmem:[%s2359_s10 + $0xe8] sm:$0xff]  ;;  %v482_v39 = vld [vmem:[%s2359_s10 + $0xb0] sm:$0xff] }
  0x8d   : > { %670 = vmatpush.msra.mxu2 %v498_v23  ;;  %735 = vmatpush.msra.mxu3 %v499_v24  ;;  %v483_v40 = vld [vmem:[%s2359_s10 + $0xb8] sm:$0xff]  ;;  %v484_v41 = vld [vmem:[%s2359_s10 + $0xc0] sm:$0xff]  ;;  %v485_v42 = vld [vmem:[%s2359_s10 + $0xc8] sm:$0xff] }
  0x8e   : > { %540 = vmatpush.msra.mxu0 %v496_v29  ;;  %605 = vmatpush.msra.mxu1 %v497_v30  ;;  %v478_v43 = vld [vmem:[%s2359_s10 + $0x90] sm:$0xff]  ;;  %v479_v44 = vld [vmem:[%s2359_s10 + $0x98] sm:$0xff]  ;;  %v480_v45 = vld [vmem:[%s2359_s10 + $0xa0] sm:$0xff] }
  0x8f   : > { %671 = vmatpush.msra.mxu2 %v494_v27  ;;  %736 = vmatpush.msra.mxu3 %v495_v28  ;;  %v481_v46 = vld [vmem:[%s2359_s10 + $0xa8] sm:$0xff]  ;;  %v474_v47 = vld [vmem:[%s2359_s10 + $0x70] sm:$0xff]  ;;  %v475_v48 = vld [vmem:[%s2359_s10 + $0x78] sm:$0xff] }
  0x90   : > { %541 = vmatpush.msra.mxu0 %v492_v33  ;;  %606 = vmatpush.msra.mxu1 %v493_v34  ;;  %v476_v49 = vld [vmem:[%s2359_s10 + $0x80] sm:$0xff]  ;;  %v477_v50 = vld [vmem:[%s2359_s10 + $0x88] sm:$0xff]  ;;  %v470_v51 = vld [vmem:[%s2359_s10 + $0x50] sm:$0xff] }
  0x91   : > { %672 = vmatpush.msra.mxu2 %v490_v31  ;;  %737 = vmatpush.msra.mxu3 %v491_v32  ;;  %v471_v52 = vld [vmem:[%s2359_s10 + $0x58] sm:$0xff]  ;;  %v472_v53 = vld [vmem:[%s2359_s10 + $0x60] sm:$0xff]  ;;  %v473_v54 = vld [vmem:[%s2359_s10 + $0x68] sm:$0xff] }
  0x92   : > { %542 = vmatpush.msra.mxu0 %v488_v37  ;;  %607 = vmatpush.msra.mxu1 %v489_v38  ;;  %v466_v55 = vld [vmem:[%s2359_s10 + $0x30] sm:$0xff]  ;;  %v467_v56 = vld [vmem:[%s2359_s10 + $0x38] sm:$0xff]  ;;  %v468_v57 = vld [vmem:[%s2359_s10 + $0x40] sm:$0xff] }
  0x93   : > { %673 = vmatpush.msra.mxu2 %v486_v35  ;;  %738 = vmatpush.msra.mxu3 %v487_v36  ;;  %v469_v58 = vld [vmem:[%s2359_s10 + $0x48] sm:$0xff]  ;;  %v462_v59 = vld [vmem:[%s2359_s10 + $0x10] sm:$0xff]  ;;  %v463_v60 = vld [vmem:[%s2359_s10 + $0x18] sm:$0xff] }
  0x94   : > { %543 = vmatpush.msra.mxu0 %v484_v41  ;;  %608 = vmatpush.msra.mxu1 %v485_v42  ;;  %v444_v61 = vld [vmem:[%s2351_s26] sm:$0xff]  ;;  %v465_v63 = vld [vmem:[%s2359_s10 + $0x28] sm:$0xff]  ;;  %v984_v6 = vld [vmem:[%s2367_s30 + $0x170] sm:$0xff] }
  0x95   : > { %674 = vmatpush.msra.mxu2 %v482_v39  ;;  %739 = vmatpush.msra.mxu3 %v483_v40  ;;  %v464_v62 = vld [vmem:[%s2359_s10 + $0x20] sm:$0xff]  ;;  %v461_v3 = vld [vmem:[%s2359_s10 + $0x8] sm:$0xff]  ;;  %v1000_v7 = vld [vmem:[%s2367_s30 + $0x1f0] sm:$0xff] }
  0x96   : > { %544 = vmatpush.msra.mxu0 %v480_v45  ;;  %609 = vmatpush.msra.mxu1 %v481_v46  ;;  %v985_v0 = vld [vmem:[%s2367_s30 + $0x178] sm:$0xff]  ;;  %v952_v8 = vld [vmem:[%s2367_s30 + $0x70] sm:$0xff]  ;;  %v445_v10 = vld [vmem:[%s2351_s26 + $0x8] sm:$0xff] }
  0x97   : > { %675 = vmatpush.msra.mxu2 %v478_v43  ;;  %740 = vmatpush.msra.mxu3 %v479_v44  ;;  %v1001_v1 = vld [vmem:[%s2367_s30 + $0x1f8] sm:$0xff]  ;;  %v968_v9 = vld [vmem:[%s2367_s30 + $0xf0] sm:$0xff]  ;;  %v983_v11 = vld [vmem:[%s2367_s30 + $0x168] sm:$0xff] }
  0x98   : > { %545 = vmatpush.msra.mxu0 %v476_v49  ;;  %610 = vmatpush.msra.mxu1 %v477_v50  ;;  %v460_v2 = vld [vmem:[%s2359_s10] sm:$0xff]  ;;  %v999_v12 = vld [vmem:[%s2367_s30 + $0x1e8] sm:$0xff]  ;;  %v982_v15 = vld [vmem:[%s2367_s30 + $0x160] sm:$0xff] }
  0x99   : > { %676 = vmatpush.msra.mxu2 %v474_v47  ;;  %741 = vmatpush.msra.mxu3 %v475_v48  ;;  %v953_v4 = vld [vmem:[%s2367_s30 + $0x78] sm:$0xff]  ;;  %v951_v13 = vld [vmem:[%s2367_s30 + $0x68] sm:$0xff]  ;;  %v998_v16 = vld [vmem:[%s2367_s30 + $0x1e0] sm:$0xff] }
  0x9a   : > { %546 = vmatpush.msra.mxu0 %v472_v53  ;;  %611 = vmatpush.msra.mxu1 %v473_v54  ;;  %v969_v5 = vld [vmem:[%s2367_s30 + $0xf8] sm:$0xff]  ;;  %v967_v14 = vld [vmem:[%s2367_s30 + $0xe8] sm:$0xff]  ;;  %v950_v17 = vld [vmem:[%s2367_s30 + $0x60] sm:$0xff] }
  0x9b   : > { %677 = vmatpush.msra.mxu2 %v470_v51  ;;  %742 = vmatpush.msra.mxu3 %v471_v52  ;;  %v966_v18 = vld [vmem:[%s2367_s30 + $0xe0] sm:$0xff]  ;;  %v981_v19 = vld [vmem:[%s2367_s30 + $0x158] sm:$0xff]  ;;  %v446_v23 = vld [vmem:[%s2351_s26 + $0x10] sm:$0xff] }
  0x9c   : > { %547 = vmatpush.msra.mxu0 %v468_v57  ;;  %612 = vmatpush.msra.mxu1 %v469_v58  ;;  %v997_v20 = vld [vmem:[%s2367_s30 + $0x1d8] sm:$0xff]  ;;  %v980_v24 = vld [vmem:[%s2367_s30 + $0x150] sm:$0xff]  ;;  %v979_v29 = vld [vmem:[%s2367_s30 + $0x148] sm:$0xff] }
  0x9d   : > { %678 = vmatpush.msra.mxu2 %v466_v55  ;;  %743 = vmatpush.msra.mxu3 %v467_v56  ;;  %v949_v21 = vld [vmem:[%s2367_s30 + $0x58] sm:$0xff]  ;;  %v996_v25 = vld [vmem:[%s2367_s30 + $0x1d0] sm:$0xff]  ;;  %v995_v30 = vld [vmem:[%s2367_s30 + $0x1c8] sm:$0xff] }
  0x9e   : > { %548 = vmatpush.msra.mxu0 %v464_v62  ;;  %613 = vmatpush.msra.mxu1 %v465_v63  ;;  %v965_v22 = vld [vmem:[%s2367_s30 + $0xd8] sm:$0xff]  ;;  %v948_v26 = vld [vmem:[%s2367_s30 + $0x50] sm:$0xff]  ;;  %v947_v31 = vld [vmem:[%s2367_s30 + $0x48] sm:$0xff] }
  0x9f   : > { %679 = vmatpush.msra.mxu2 %v462_v59  ;;  %744 = vmatpush.msra.mxu3 %v463_v60  ;;  %v964_v27 = vld [vmem:[%s2367_s30 + $0xd0] sm:$0xff]  ;;  %v963_v32 = vld [vmem:[%s2367_s30 + $0xc8] sm:$0xff]  ;;  %v448_v33 = vld [vmem:[%s2351_s26 + $0x20] sm:$0xff] }
  0xa0   : > { %680 = vmatmul.f32.vlgmr.msra.gmra.mxu2 %v444_v61  ;;  %745 = vmatmul.f32.vlgmr.msra.gmra.mxu3 %v444_v61  ;;  %v447_v28 = vld [vmem:[%s2351_s26 + $0x18] sm:$0xff]  ;;  %v978_v34 = vld [vmem:[%s2367_s30 + $0x140] sm:$0xff]  ;;  %v977_v39 = vld [vmem:[%s2367_s30 + $0x138] sm:$0xff] }
  0xa1   : > { %1132 = vmatpush.msrb.mxu2 %v985_v0  ;;  %1197 = vmatpush.msrb.mxu3 %v1001_v1  ;;  %v994_v35 = vld [vmem:[%s2367_s30 + $0x1c0] sm:$0xff]  ;;  %v993_v40 = vld [vmem:[%s2367_s30 + $0x1b8] sm:$0xff]  ;;  %v450_v43 = vld [vmem:[%s2351_s26 + $0x30] sm:$0xff] }
  0xa2   : > { %549 = vmatpush.msra.mxu0 %v460_v2  ;;  %614 = vmatpush.msra.mxu1 %v461_v3  ;;  %v946_v36 = vld [vmem:[%s2367_s30 + $0x40] sm:$0xff]  ;;  %v945_v41 = vld [vmem:[%s2367_s30 + $0x38] sm:$0xff]  ;;  %v976_v44 = vld [vmem:[%s2367_s30 + $0x130] sm:$0xff] }
  0xa3   : > { %550 = vmatmul.f32.vlgmr.msra.gmra.mxu0 %v444_v61  ;;  %615 = vmatmul.f32.vlgmr.msra.gmra.mxu1 %v444_v61  ;;  %v962_v37 = vld [vmem:[%s2367_s30 + $0xc0] sm:$0xff]  ;;  %v961_v42 = vld [vmem:[%s2367_s30 + $0xb8] sm:$0xff]  ;;  %v992_v45 = vld [vmem:[%s2367_s30 + $0x1b0] sm:$0xff] }
  0xa4   : > { %1002 = vmatpush.msrb.mxu0 %v953_v4  ;;  %1067 = vmatpush.msrb.mxu1 %v969_v5  ;;  %v449_v38 = vld [vmem:[%s2351_s26 + $0x28] sm:$0xff]  ;;  %v944_v46 = vld [vmem:[%s2367_s30 + $0x30] sm:$0xff]  ;;  %v975_v49 = vld [vmem:[%s2367_s30 + $0x128] sm:$0xff] }
  0xa5   : > { %1133 = vmatpush.msrb.mxu2 %v984_v6  ;;  %1198 = vmatpush.msrb.mxu3 %v1000_v7  ;;  %v960_v47 = vld [vmem:[%s2367_s30 + $0xb0] sm:$0xff]  ;;  %v991_v50 = vld [vmem:[%s2367_s30 + $0x1a8] sm:$0xff]  ;;  %v452_v53 = vld [vmem:[%s2351_s26 + $0x40] sm:$0xff] }
  0xa6   : > { %1003 = vmatpush.msrb.mxu0 %v952_v8  ;;  %1068 = vmatpush.msrb.mxu1 %v968_v9  ;;  %v451_v48 = vld [vmem:[%s2351_s26 + $0x38] sm:$0xff]  ;;  %v943_v51 = vld [vmem:[%s2367_s30 + $0x28] sm:$0xff]  ;;  %v974_v54 = vld [vmem:[%s2367_s30 + $0x120] sm:$0xff] }
  0xa7   : > { %1134 = vmatpush.msrb.mxu2 %v983_v11  ;;  %1199 = vmatpush.msrb.mxu3 %v999_v12  ;;  %v959_v52 = vld [vmem:[%s2367_s30 + $0xa8] sm:$0xff]  ;;  %v990_v55 = vld [vmem:[%s2367_s30 + $0x1a0] sm:$0xff]  ;;  %v973_v59 = vld [vmem:[%s2367_s30 + $0x118] sm:$0xff] }
  0xa8   : > { %683 = vmatmul.f32.gmra.mxu2 %v445_v10  ;;  %748 = vmatmul.f32.gmra.mxu3 %v445_v10  ;;  %v942_v56 = vld [vmem:[%s2367_s30 + $0x20] sm:$0xff]  ;;  %v989_v60 = vld [vmem:[%s2367_s30 + $0x198] sm:$0xff]  ;;  %v454_v63 = vld [vmem:[%s2351_s26 + $0x50] sm:$0xff] }
  0xa9   : > { %1004 = vmatpush.msrb.mxu0 %v951_v13  ;;  %1069 = vmatpush.msrb.mxu1 %v967_v14  ;;  %v958_v57 = vld [vmem:[%s2367_s30 + $0xa0] sm:$0xff]  ;;  %v941_v61 = vld [vmem:[%s2367_s30 + $0x18] sm:$0xff]  ;;  %v972_v0 = vld [vmem:[%s2367_s30 + $0x110] sm:$0xff] }
  0xaa   : > { %1135 = vmatpush.msrb.mxu2 %v982_v15  ;;  %1200 = vmatpush.msrb.mxu3 %v998_v16  ;;  %v453_v58 = vld [vmem:[%s2351_s26 + $0x48] sm:$0xff]  ;;  %v957_v62 = vld [vmem:[%s2367_s30 + $0x98] sm:$0xff]  ;;  %v988_v1 = vld [vmem:[%s2367_s30 + $0x190] sm:$0xff] }
  0xab   : > { %553 = vmatmul.f32.gmra.mxu0 %v445_v10  ;;  %618 = vmatmul.f32.gmra.mxu1 %v445_v10  ;;  %v940_v2 = vld [vmem:[%s2367_s30 + $0x10] sm:$0xff]  ;;  %v971_v5 = vld [vmem:[%s2367_s30 + $0x108] sm:$0xff]  ;;  %v970_v9 = vld [vmem:[%s2367_s30 + $0x100] sm:$0xff] }
  0xac   : > { %1005 = vmatpush.msrb.mxu0 %v950_v17  ;;  %1070 = vmatpush.msrb.mxu1 %v966_v18  ;;  %v956_v3 = vld [vmem:[%s2367_s30 + $0x90] sm:$0xff]  ;;  %v987_v6 = vld [vmem:[%s2367_s30 + $0x188] sm:$0xff]  ;;  %v986_v10 = vld [vmem:[%s2367_s30 + $0x180] sm:$0xff] }
  0xad   : > { %1136 = vmatpush.msrb.mxu2 %v981_v19  ;;  %1201 = vmatpush.msrb.mxu3 %v997_v20  ;;  %v455_v4 = vld [vmem:[%s2351_s26 + $0x58] sm:$0xff]  ;;  %v939_v7 = vld [vmem:[%s2367_s30 + $0x8] sm:$0xff]  ;;  %v456_v11 = vld [vmem:[%s2351_s26 + $0x60] sm:$0xff] }
  0xae   : > { %1006 = vmatpush.msrb.mxu0 %v949_v21  ;;  %1071 = vmatpush.msrb.mxu1 %v965_v22  ;;  %v955_v8 = vld [vmem:[%s2367_s30 + $0x88] sm:$0xff]  ;;  %v457_v12 = vld [vmem:[%s2351_s26 + $0x68] sm:$0xff]  ;;  %v459_v16 = vld [vmem:[%s2351_s26 + $0x78] sm:$0xff] }
  0xaf   : > { %1137 = vmatpush.msrb.mxu2 %v980_v24  ;;  %1202 = vmatpush.msrb.mxu3 %v996_v25  ;;  %v938_v13 = vld [vmem:[%s2367_s30] sm:$0xff]  ;;  %v458_v15 = vld [vmem:[%s2351_s26 + $0x70] sm:$0xff]  ;;  %v524_v17 = vld [vmem:[%s2365_s21] sm:$0xf] }
  0xb0   : > { %686 = vmatmul.f32.gmra.mxu2 %v446_v23  ;;  %751 = vmatmul.f32.gmra.mxu3 %v446_v23  ;;  %v954_v14 = vld [vmem:[%s2367_s30 + $0x80] sm:$0xff]  ;;  %v2526_v18 = vperm.slane %v524_v17, 0  ;;  %v2528_v19 = vperm.slane %v524_v17, 1  ;;  %v2530_v20 = vperm.slane %v524_v17, 2  ;;  %v2532_v21 = vperm.slane %v524_v17, 3 }
  0xb1   : > { %1007 = vmatpush.msrb.mxu0 %v948_v26  ;;  %1072 = vmatpush.msrb.mxu1 %v964_v27 }
  0xb2   : > { %1138 = vmatpush.msrb.mxu2 %v979_v29  ;;  %1203 = vmatpush.msrb.mxu3 %v995_v30 }
  0xb3   : > { %556 = vmatmul.f32.gmra.mxu0 %v446_v23  ;;  %621 = vmatmul.f32.gmra.mxu1 %v446_v23 }
  0xb4   : > { %1008 = vmatpush.msrb.mxu0 %v947_v31  ;;  %1073 = vmatpush.msrb.mxu1 %v963_v32 }
  0xb5   : > { %1139 = vmatpush.msrb.mxu2 %v978_v34  ;;  %1204 = vmatpush.msrb.mxu3 %v994_v35 }
  0xb6   : > { %1009 = vmatpush.msrb.mxu0 %v946_v36  ;;  %1074 = vmatpush.msrb.mxu1 %v962_v37 }
  0xb7   : > { %1140 = vmatpush.msrb.mxu2 %v977_v39  ;;  %1205 = vmatpush.msrb.mxu3 %v993_v40 }
  0xb8   : > { %689 = vmatmul.f32.gmra.mxu2 %v447_v28  ;;  %754 = vmatmul.f32.gmra.mxu3 %v447_v28 }
  0xb9   : > { %1010 = vmatpush.msrb.mxu0 %v945_v41  ;;  %1075 = vmatpush.msrb.mxu1 %v961_v42 }
  0xba   : > { %1141 = vmatpush.msrb.mxu2 %v976_v44  ;;  %1206 = vmatpush.msrb.mxu3 %v992_v45 }
  0xbb   : > { %559 = vmatmul.f32.gmra.mxu0 %v447_v28  ;;  %624 = vmatmul.f32.gmra.mxu1 %v447_v28 }
  0xbc   : > { %1011 = vmatpush.msrb.mxu0 %v944_v46  ;;  %1076 = vmatpush.msrb.mxu1 %v960_v47 }
  0xbd   : > { %1142 = vmatpush.msrb.mxu2 %v975_v49  ;;  %1207 = vmatpush.msrb.mxu3 %v991_v50 }
  0xbe   : > { %1012 = vmatpush.msrb.mxu0 %v943_v51  ;;  %1077 = vmatpush.msrb.mxu1 %v959_v52 }
  0xbf   : > { %1143 = vmatpush.msrb.mxu2 %v974_v54  ;;  %1208 = vmatpush.msrb.mxu3 %v990_v55 }
  0xc0   : > { %692 = vmatmul.f32.gmra.mxu2 %v448_v33  ;;  %757 = vmatmul.f32.gmra.mxu3 %v448_v33 }
  0xc1   : > { %1013 = vmatpush.msrb.mxu0 %v942_v56  ;;  %1078 = vmatpush.msrb.mxu1 %v958_v57 }
  0xc2   : > { %1144 = vmatpush.msrb.mxu2 %v973_v59  ;;  %1209 = vmatpush.msrb.mxu3 %v989_v60 }
  0xc3   : > { %562 = vmatmul.f32.gmra.mxu0 %v448_v33  ;;  %627 = vmatmul.f32.gmra.mxu1 %v448_v33 }
  0xc4   : > { %1014 = vmatpush.msrb.mxu0 %v941_v61  ;;  %1079 = vmatpush.msrb.mxu1 %v957_v62 }
  0xc5   : > { %1145 = vmatpush.msrb.mxu2 %v972_v0  ;;  %1210 = vmatpush.msrb.mxu3 %v988_v1 }
  0xc6   : > { %1015 = vmatpush.msrb.mxu0 %v940_v2  ;;  %1080 = vmatpush.msrb.mxu1 %v956_v3 }
  0xc7   : > { %1146 = vmatpush.msrb.mxu2 %v971_v5  ;;  %1211 = vmatpush.msrb.mxu3 %v987_v6 }
  0xc8   : > { %695 = vmatmul.f32.gmra.mxu2 %v449_v38  ;;  %760 = vmatmul.f32.gmra.mxu3 %v449_v38 }
  0xc9   : > { %1016 = vmatpush.msrb.mxu0 %v939_v7  ;;  %1081 = vmatpush.msrb.mxu1 %v955_v8 }
  0xca   : > { %1147 = vmatpush.msrb.mxu2 %v970_v9  ;;  %1212 = vmatpush.msrb.mxu3 %v986_v10 }
  0xcb   : > { %565 = vmatmul.f32.gmra.mxu0 %v449_v38  ;;  %630 = vmatmul.f32.gmra.mxu1 %v449_v38 }
  0xcc   : > { %1017 = vmatpush.msrb.mxu0 %v938_v13  ;;  %1082 = vmatpush.msrb.mxu1 %v954_v14 }
  0xd0   : > { %698 = vmatmul.f32.gmra.mxu2 %v450_v43  ;;  %763 = vmatmul.f32.gmra.mxu3 %v450_v43 }
  0xd3   : > { %568 = vmatmul.f32.gmra.mxu0 %v450_v43  ;;  %633 = vmatmul.f32.gmra.mxu1 %v450_v43 }
  0xd8   : > { %701 = vmatmul.f32.gmra.mxu2 %v451_v48  ;;  %766 = vmatmul.f32.gmra.mxu3 %v451_v48 }
  0xdb   : > { %571 = vmatmul.f32.gmra.mxu0 %v451_v48  ;;  %636 = vmatmul.f32.gmra.mxu1 %v451_v48 }
  0xe0   : > { %704 = vmatmul.f32.gmra.mxu2 %v452_v53  ;;  %769 = vmatmul.f32.gmra.mxu3 %v452_v53 }
  0xe3   : > { %574 = vmatmul.f32.gmra.mxu0 %v452_v53  ;;  %639 = vmatmul.f32.gmra.mxu1 %v452_v53 }
  0xe8   : > { %707 = vmatmul.f32.gmra.mxu2 %v453_v58  ;;  %772 = vmatmul.f32.gmra.mxu3 %v453_v58 }
  0xeb   : > { %577 = vmatmul.f32.gmra.mxu0 %v453_v58  ;;  %642 = vmatmul.f32.gmra.mxu1 %v453_v58 }
  0xf0   : > { %710 = vmatmul.f32.gmra.mxu2 %v454_v63  ;;  %775 = vmatmul.f32.gmra.mxu3 %v454_v63 }
  0xf3   : > { %580 = vmatmul.f32.gmra.mxu0 %v454_v63  ;;  %645 = vmatmul.f32.gmra.mxu1 %v454_v63 }
  0xf8   : > { %713 = vmatmul.f32.gmra.mxu2 %v455_v4  ;;  %778 = vmatmul.f32.gmra.mxu3 %v455_v4 }
  0xfb   : > { %583 = vmatmul.f32.gmra.mxu0 %v455_v4  ;;  %648 = vmatmul.f32.gmra.mxu1 %v455_v4 }
 0x100   : > { %716 = vmatmul.f32.gmra.mxu2 %v456_v11  ;;  %781 = vmatmul.f32.gmra.mxu3 %v456_v11 }
 0x103   : > { %586 = vmatmul.f32.gmra.mxu0 %v456_v11  ;;  %651 = vmatmul.f32.gmra.mxu1 %v456_v11 }
 0x108   : > { %719 = vmatmul.f32.gmra.mxu2 %v457_v12  ;;  %784 = vmatmul.f32.gmra.mxu3 %v457_v12 }
 0x10b   : > { %589 = vmatmul.f32.gmra.mxu0 %v457_v12  ;;  %654 = vmatmul.f32.gmra.mxu1 %v457_v12 }
 0x110   : > { %722 = vmatmul.f32.gmra.mxu2 %v458_v15  ;;  %787 = vmatmul.f32.gmra.mxu3 %v458_v15 }
 0x113   : > { %592 = vmatmul.f32.gmra.mxu0 %v458_v15  ;;  %657 = vmatmul.f32.gmra.mxu1 %v458_v15 }
 0x118   : > { %725 = vmatmul.f32.gmra.mxu2 %v459_v16  ;;  %790 = vmatmul.f32.gmra.mxu3 %v459_v16 }
 0x11b   : > { %595 = vmatmul.f32.gmra.mxu0 %v459_v16  ;;  %660 = vmatmul.f32.gmra.mxu1 %v459_v16 }
 0x120   : > { %v551_v22 = vpop.f32.mrf.mxu0  ;;  %v616_v23 = vpop.f32.mrf.mxu1 }
 0x121   : > { %v552_v24 = vadd.f32 %v551_v22, %v2526_v18  ;;  %v617_v25 = vadd.f32 %v616_v23, %v2528_v19 }
 0x123   : > { %v681_v26 = vpop.f32.mrf.mxu2  ;;  %v746_v27 = vpop.f32.mrf.mxu3  ;;  %v794_v30 = vmax.f32 %v552_v24, 0.0  ;;  %v795_v31 = vmax.f32 %v617_v25, 0.0 }
 0x124   : > { %v682_v28 = vadd.f32 %v681_v26, %v2530_v20  ;;  %v747_v29 = vadd.f32 %v746_v27, %v2532_v21 }
 0x125   : > { %858 = vst [vmem:[%s2378_s29] sm:$0xff] %v794_v30  ;;  %1018 = vmatmul.f32.vlgmr.msrb.gmra.mxu0 %v794_v30  ;;  %1083 = vmatmul.f32.vlgmr.msrb.gmra.mxu1 %v795_v31 }
 0x126   : > { %v796_v32 = vmax.f32 %v682_v28, 0.0  ;;  %v797_v33 = vmax.f32 %v747_v29, 0.0  ;;  %859 = vst [vmem:[%s2378_s29 + $0x8] sm:$0xff] %v795_v31 }
 0x128   : > { %860 = vst [vmem:[%s2378_s29 + $0x10] sm:$0xff] %v796_v32  ;;  %1148 = vmatmul.f32.vlgmr.msrb.gmra.mxu2 %v796_v32  ;;  %1213 = vmatmul.f32.vlgmr.msrb.gmra.mxu3 %v797_v33  ;;  %v554_v34 = vpop.f32.mrf.mxu0  ;;  %v619_v35 = vpop.f32.mrf.mxu1 }
 0x129   : > { %861 = vst [vmem:[%s2378_s29 + $0x18] sm:$0xff] %v797_v33  ;;  %v555_v36 = vadd.f32 %v554_v34, %v2526_v18  ;;  %v620_v37 = vadd.f32 %v619_v35, %v2528_v19 }
 0x12b   : > { %v684_v38 = vpop.f32.mrf.mxu2  ;;  %v749_v39 = vpop.f32.mrf.mxu3  ;;  %v798_v42 = vmax.f32 %v555_v36, 0.0  ;;  %v799_v43 = vmax.f32 %v620_v37, 0.0 }
 0x12c   : > { %v685_v40 = vadd.f32 %v684_v38, %v2530_v20  ;;  %v750_v41 = vadd.f32 %v749_v39, %v2532_v21 }
 0x12d   : > { %862 = vst [vmem:[%s2378_s29 + $0x20] sm:$0xff] %v798_v42  ;;  %1021 = vmatmul.f32.gmra.mxu0 %v798_v42  ;;  %1086 = vmatmul.f32.gmra.mxu1 %v799_v43 }
 0x12e   : > { %v800_v44 = vmax.f32 %v685_v40, 0.0  ;;  %v801_v45 = vmax.f32 %v750_v41, 0.0  ;;  %863 = vst [vmem:[%s2378_s29 + $0x28] sm:$0xff] %v799_v43 }
 0x130   : > { %864 = vst [vmem:[%s2378_s29 + $0x30] sm:$0xff] %v800_v44  ;;  %1151 = vmatmul.f32.gmra.mxu2 %v800_v44  ;;  %1216 = vmatmul.f32.gmra.mxu3 %v801_v45  ;;  %v557_v46 = vpop.f32.mrf.mxu0  ;;  %v622_v47 = vpop.f32.mrf.mxu1 }
 0x131   : > { %865 = vst [vmem:[%s2378_s29 + $0x38] sm:$0xff] %v801_v45  ;;  %v558_v48 = vadd.f32 %v557_v46, %v2526_v18  ;;  %v623_v49 = vadd.f32 %v622_v47, %v2528_v19 }
 0x133   : > { %v687_v50 = vpop.f32.mrf.mxu2  ;;  %v752_v51 = vpop.f32.mrf.mxu3  ;;  %v802_v54 = vmax.f32 %v558_v48, 0.0  ;;  %v803_v55 = vmax.f32 %v623_v49, 0.0 }
 0x134   : > { %v688_v52 = vadd.f32 %v687_v50, %v2530_v20  ;;  %v753_v53 = vadd.f32 %v752_v51, %v2532_v21 }
 0x135   : > { %866 = vst [vmem:[%s2378_s29 + $0x40] sm:$0xff] %v802_v54  ;;  %1024 = vmatmul.f32.gmra.mxu0 %v802_v54  ;;  %1089 = vmatmul.f32.gmra.mxu1 %v803_v55 }
 0x136   : > { %v804_v56 = vmax.f32 %v688_v52, 0.0  ;;  %v805_v57 = vmax.f32 %v753_v53, 0.0  ;;  %867 = vst [vmem:[%s2378_s29 + $0x48] sm:$0xff] %v803_v55 }
 0x138   : > { %868 = vst [vmem:[%s2378_s29 + $0x50] sm:$0xff] %v804_v56  ;;  %1154 = vmatmul.f32.gmra.mxu2 %v804_v56  ;;  %1219 = vmatmul.f32.gmra.mxu3 %v805_v57  ;;  %v560_v58 = vpop.f32.mrf.mxu0  ;;  %v625_v59 = vpop.f32.mrf.mxu1 }
 0x139   : > { %869 = vst [vmem:[%s2378_s29 + $0x58] sm:$0xff] %v805_v57  ;;  %v561_v60 = vadd.f32 %v560_v58, %v2526_v18  ;;  %v626_v61 = vadd.f32 %v625_v59, %v2528_v19 }
 0x13b   : > { %v690_v62 = vpop.f32.mrf.mxu2  ;;  %v755_v63 = vpop.f32.mrf.mxu3  ;;  %v806_v2 = vmax.f32 %v561_v60, 0.0  ;;  %v807_v3 = vmax.f32 %v626_v61, 0.0 }
 0x13c   : > { %v691_v0 = vadd.f32 %v690_v62, %v2530_v20  ;;  %v756_v1 = vadd.f32 %v755_v63, %v2532_v21 }
 0x13d   : > { %870 = vst [vmem:[%s2378_s29 + $0x60] sm:$0xff] %v806_v2  ;;  %1027 = vmatmul.f32.gmra.mxu0 %v806_v2  ;;  %1092 = vmatmul.f32.gmra.mxu1 %v807_v3 }
 0x13e   : > { %v808_v4 = vmax.f32 %v691_v0, 0.0  ;;  %v809_v5 = vmax.f32 %v756_v1, 0.0  ;;  %871 = vst [vmem:[%s2378_s29 + $0x68] sm:$0xff] %v807_v3 }
 0x140   : > { %872 = vst [vmem:[%s2378_s29 + $0x70] sm:$0xff] %v808_v4  ;;  %1157 = vmatmul.f32.gmra.mxu2 %v808_v4  ;;  %1222 = vmatmul.f32.gmra.mxu3 %v809_v5  ;;  %v563_v6 = vpop.f32.mrf.mxu0  ;;  %v628_v7 = vpop.f32.mrf.mxu1 }
 0x141   : > { %873 = vst [vmem:[%s2378_s29 + $0x78] sm:$0xff] %v809_v5  ;;  %v564_v8 = vadd.f32 %v563_v6, %v2526_v18  ;;  %v629_v9 = vadd.f32 %v628_v7, %v2528_v19 }
 0x143   : > { %v693_v10 = vpop.f32.mrf.mxu2  ;;  %v758_v11 = vpop.f32.mrf.mxu3  ;;  %v810_v14 = vmax.f32 %v564_v8, 0.0  ;;  %v811_v15 = vmax.f32 %v629_v9, 0.0 }
 0x144   : > { %v694_v12 = vadd.f32 %v693_v10, %v2530_v20  ;;  %v759_v13 = vadd.f32 %v758_v11, %v2532_v21 }
 0x145   : > { %874 = vst [vmem:[%s2378_s29 + $0x80] sm:$0xff] %v810_v14  ;;  %1030 = vmatmul.f32.gmra.mxu0 %v810_v14  ;;  %1095 = vmatmul.f32.gmra.mxu1 %v811_v15 }
 0x146   : > { %v812_v16 = vmax.f32 %v694_v12, 0.0  ;;  %v813_v17 = vmax.f32 %v759_v13, 0.0  ;;  %875 = vst [vmem:[%s2378_s29 + $0x88] sm:$0xff] %v811_v15 }
 0x148   : > { %876 = vst [vmem:[%s2378_s29 + $0x90] sm:$0xff] %v812_v16  ;;  %1160 = vmatmul.f32.gmra.mxu2 %v812_v16  ;;  %1225 = vmatmul.f32.gmra.mxu3 %v813_v17  ;;  %v566_v22 = vpop.f32.mrf.mxu0  ;;  %v631_v23 = vpop.f32.mrf.mxu1 }
 0x149   : > { %877 = vst [vmem:[%s2378_s29 + $0x98] sm:$0xff] %v813_v17  ;;  %v567_v24 = vadd.f32 %v566_v22, %v2526_v18  ;;  %v632_v25 = vadd.f32 %v631_v23, %v2528_v19 }
 0x14b   : > { %v696_v26 = vpop.f32.mrf.mxu2  ;;  %v761_v27 = vpop.f32.mrf.mxu3  ;;  %v814_v30 = vmax.f32 %v567_v24, 0.0  ;;  %v815_v31 = vmax.f32 %v632_v25, 0.0 }
 0x14c   : > { %v697_v28 = vadd.f32 %v696_v26, %v2530_v20  ;;  %v762_v29 = vadd.f32 %v761_v27, %v2532_v21 }
 0x14d   : > { %878 = vst [vmem:[%s2378_s29 + $0xa0] sm:$0xff] %v814_v30  ;;  %1033 = vmatmul.f32.gmra.mxu0 %v814_v30  ;;  %1098 = vmatmul.f32.gmra.mxu1 %v815_v31 }
 0x14e   : > { %v816_v32 = vmax.f32 %v697_v28, 0.0  ;;  %v817_v33 = vmax.f32 %v762_v29, 0.0  ;;  %879 = vst [vmem:[%s2378_s29 + $0xa8] sm:$0xff] %v815_v31 }
 0x150   : > { %880 = vst [vmem:[%s2378_s29 + $0xb0] sm:$0xff] %v816_v32  ;;  %1163 = vmatmul.f32.gmra.mxu2 %v816_v32  ;;  %1228 = vmatmul.f32.gmra.mxu3 %v817_v33  ;;  %v569_v34 = vpop.f32.mrf.mxu0  ;;  %v634_v35 = vpop.f32.mrf.mxu1 }
 0x151   : > { %881 = vst [vmem:[%s2378_s29 + $0xb8] sm:$0xff] %v817_v33  ;;  %v570_v36 = vadd.f32 %v569_v34, %v2526_v18  ;;  %v635_v37 = vadd.f32 %v634_v35, %v2528_v19 }
 0x153   : > { %v699_v38 = vpop.f32.mrf.mxu2  ;;  %v764_v39 = vpop.f32.mrf.mxu3  ;;  %v818_v42 = vmax.f32 %v570_v36, 0.0  ;;  %v819_v43 = vmax.f32 %v635_v37, 0.0 }
 0x154   : > { %v700_v40 = vadd.f32 %v699_v38, %v2530_v20  ;;  %v765_v41 = vadd.f32 %v764_v39, %v2532_v21 }
 0x155   : > { %882 = vst [vmem:[%s2378_s29 + $0xc0] sm:$0xff] %v818_v42  ;;  %1036 = vmatmul.f32.gmra.mxu0 %v818_v42  ;;  %1101 = vmatmul.f32.gmra.mxu1 %v819_v43 }
 0x156   : > { %v820_v44 = vmax.f32 %v700_v40, 0.0  ;;  %v821_v45 = vmax.f32 %v765_v41, 0.0  ;;  %883 = vst [vmem:[%s2378_s29 + $0xc8] sm:$0xff] %v819_v43 }
 0x158   : > { %884 = vst [vmem:[%s2378_s29 + $0xd0] sm:$0xff] %v820_v44  ;;  %1166 = vmatmul.f32.gmra.mxu2 %v820_v44  ;;  %1231 = vmatmul.f32.gmra.mxu3 %v821_v45  ;;  %v572_v46 = vpop.f32.mrf.mxu0  ;;  %v637_v47 = vpop.f32.mrf.mxu1 }
 0x159   : > { %885 = vst [vmem:[%s2378_s29 + $0xd8] sm:$0xff] %v821_v45  ;;  %v573_v48 = vadd.f32 %v572_v46, %v2526_v18  ;;  %v638_v49 = vadd.f32 %v637_v47, %v2528_v19 }
 0x15b   : > { %v702_v50 = vpop.f32.mrf.mxu2  ;;  %v767_v51 = vpop.f32.mrf.mxu3  ;;  %v822_v54 = vmax.f32 %v573_v48, 0.0  ;;  %v823_v55 = vmax.f32 %v638_v49, 0.0 }
 0x15c   : > { %v703_v52 = vadd.f32 %v702_v50, %v2530_v20  ;;  %v768_v53 = vadd.f32 %v767_v51, %v2532_v21 }
 0x15d   : > { %886 = vst [vmem:[%s2378_s29 + $0xe0] sm:$0xff] %v822_v54  ;;  %1039 = vmatmul.f32.gmra.mxu0 %v822_v54  ;;  %1104 = vmatmul.f32.gmra.mxu1 %v823_v55 }
 0x15e   : > { %v824_v56 = vmax.f32 %v703_v52, 0.0  ;;  %v825_v57 = vmax.f32 %v768_v53, 0.0  ;;  %887 = vst [vmem:[%s2378_s29 + $0xe8] sm:$0xff] %v823_v55 }
 0x160   : > { %888 = vst [vmem:[%s2378_s29 + $0xf0] sm:$0xff] %v824_v56  ;;  %1169 = vmatmul.f32.gmra.mxu2 %v824_v56  ;;  %1234 = vmatmul.f32.gmra.mxu3 %v825_v57  ;;  %v575_v58 = vpop.f32.mrf.mxu0  ;;  %v640_v59 = vpop.f32.mrf.mxu1 }
 0x161   : > { %889 = vst [vmem:[%s2378_s29 + $0xf8] sm:$0xff] %v825_v57  ;;  %v576_v60 = vadd.f32 %v575_v58, %v2526_v18  ;;  %v641_v61 = vadd.f32 %v640_v59, %v2528_v19 }
 0x163   : > { %v705_v62 = vpop.f32.mrf.mxu2  ;;  %v770_v63 = vpop.f32.mrf.mxu3  ;;  %v826_v2 = vmax.f32 %v576_v60, 0.0  ;;  %v827_v3 = vmax.f32 %v641_v61, 0.0 }
 0x164   : > { %v706_v0 = vadd.f32 %v705_v62, %v2530_v20  ;;  %v771_v1 = vadd.f32 %v770_v63, %v2532_v21 }
 0x165   : > { %890 = vst [vmem:[%s2378_s29 + $0x100] sm:$0xff] %v826_v2  ;;  %1042 = vmatmul.f32.gmra.mxu0 %v826_v2  ;;  %1107 = vmatmul.f32.gmra.mxu1 %v827_v3 }
 0x166   : > { %v828_v4 = vmax.f32 %v706_v0, 0.0  ;;  %v829_v5 = vmax.f32 %v771_v1, 0.0  ;;  %891 = vst [vmem:[%s2378_s29 + $0x108] sm:$0xff] %v827_v3 }
 0x168   : > { %892 = vst [vmem:[%s2378_s29 + $0x110] sm:$0xff] %v828_v4  ;;  %1172 = vmatmul.f32.gmra.mxu2 %v828_v4  ;;  %1237 = vmatmul.f32.gmra.mxu3 %v829_v5  ;;  %v578_v6 = vpop.f32.mrf.mxu0  ;;  %v643_v7 = vpop.f32.mrf.mxu1 }
 0x169   : > { %893 = vst [vmem:[%s2378_s29 + $0x118] sm:$0xff] %v829_v5  ;;  %v579_v8 = vadd.f32 %v578_v6, %v2526_v18  ;;  %v644_v9 = vadd.f32 %v643_v7, %v2528_v19 }
 0x16b   : > { %v708_v10 = vpop.f32.mrf.mxu2  ;;  %v773_v11 = vpop.f32.mrf.mxu3  ;;  %v830_v14 = vmax.f32 %v579_v8, 0.0  ;;  %v831_v15 = vmax.f32 %v644_v9, 0.0 }
 0x16c   : > { %v709_v12 = vadd.f32 %v708_v10, %v2530_v20  ;;  %v774_v13 = vadd.f32 %v773_v11, %v2532_v21 }
 0x16d   : > { %894 = vst [vmem:[%s2378_s29 + $0x120] sm:$0xff] %v830_v14  ;;  %1045 = vmatmul.f32.gmra.mxu0 %v830_v14  ;;  %1110 = vmatmul.f32.gmra.mxu1 %v831_v15 }
 0x16e   : > { %v832_v16 = vmax.f32 %v709_v12, 0.0  ;;  %v833_v17 = vmax.f32 %v774_v13, 0.0  ;;  %895 = vst [vmem:[%s2378_s29 + $0x128] sm:$0xff] %v831_v15 }
 0x170   : > { %896 = vst [vmem:[%s2378_s29 + $0x130] sm:$0xff] %v832_v16  ;;  %1175 = vmatmul.f32.gmra.mxu2 %v832_v16  ;;  %1240 = vmatmul.f32.gmra.mxu3 %v833_v17  ;;  %v581_v22 = vpop.f32.mrf.mxu0  ;;  %v646_v23 = vpop.f32.mrf.mxu1 }
 0x171   : > { %897 = vst [vmem:[%s2378_s29 + $0x138] sm:$0xff] %v833_v17  ;;  %v582_v24 = vadd.f32 %v581_v22, %v2526_v18  ;;  %v647_v25 = vadd.f32 %v646_v23, %v2528_v19 }
 0x173   : > { %v711_v26 = vpop.f32.mrf.mxu2  ;;  %v776_v27 = vpop.f32.mrf.mxu3  ;;  %v834_v30 = vmax.f32 %v582_v24, 0.0  ;;  %v835_v31 = vmax.f32 %v647_v25, 0.0 }
 0x174   : > { %v712_v28 = vadd.f32 %v711_v26, %v2530_v20  ;;  %v777_v29 = vadd.f32 %v776_v27, %v2532_v21 }
 0x175   : > { %898 = vst [vmem:[%s2378_s29 + $0x140] sm:$0xff] %v834_v30  ;;  %1048 = vmatmul.f32.gmra.mxu0 %v834_v30  ;;  %1113 = vmatmul.f32.gmra.mxu1 %v835_v31 }
 0x176   : > { %v836_v32 = vmax.f32 %v712_v28, 0.0  ;;  %v837_v33 = vmax.f32 %v777_v29, 0.0  ;;  %899 = vst [vmem:[%s2378_s29 + $0x148] sm:$0xff] %v835_v31 }
 0x178   : > { %900 = vst [vmem:[%s2378_s29 + $0x150] sm:$0xff] %v836_v32  ;;  %1178 = vmatmul.f32.gmra.mxu2 %v836_v32  ;;  %1243 = vmatmul.f32.gmra.mxu3 %v837_v33  ;;  %v584_v34 = vpop.f32.mrf.mxu0  ;;  %v649_v35 = vpop.f32.mrf.mxu1 }
 0x179   : > { %901 = vst [vmem:[%s2378_s29 + $0x158] sm:$0xff] %v837_v33  ;;  %v585_v36 = vadd.f32 %v584_v34, %v2526_v18  ;;  %v650_v37 = vadd.f32 %v649_v35, %v2528_v19 }
 0x17b   : > { %v714_v38 = vpop.f32.mrf.mxu2  ;;  %v779_v39 = vpop.f32.mrf.mxu3  ;;  %v838_v42 = vmax.f32 %v585_v36, 0.0  ;;  %v839_v43 = vmax.f32 %v650_v37, 0.0 }
 0x17c   : > { %v715_v40 = vadd.f32 %v714_v38, %v2530_v20  ;;  %v780_v41 = vadd.f32 %v779_v39, %v2532_v21  ;;  %v922_v38 = vld [vmem:[#allocation2 + $0x30] sm:$0xff] }
 0x17d   : > { %902 = vst [vmem:[%s2378_s29 + $0x160] sm:$0xff] %v838_v42  ;;  %1051 = vmatmul.f32.gmra.mxu0 %v838_v42  ;;  %1116 = vmatmul.f32.gmra.mxu1 %v839_v43 }
 0x17e   : > { %v840_v44 = vmax.f32 %v715_v40, 0.0  ;;  %v841_v45 = vmax.f32 %v780_v41, 0.0  ;;  %903 = vst [vmem:[%s2378_s29 + $0x168] sm:$0xff] %v839_v43 }
 0x180   : > { %904 = vst [vmem:[%s2378_s29 + $0x170] sm:$0xff] %v840_v44  ;;  %1181 = vmatmul.f32.gmra.mxu2 %v840_v44  ;;  %1246 = vmatmul.f32.gmra.mxu3 %v841_v45  ;;  %v587_v46 = vpop.f32.mrf.mxu0  ;;  %v652_v47 = vpop.f32.mrf.mxu1 }
 0x181   : > { %905 = vst [vmem:[%s2378_s29 + $0x178] sm:$0xff] %v841_v45  ;;  %v588_v48 = vadd.f32 %v587_v46, %v2526_v18  ;;  %v653_v49 = vadd.f32 %v652_v47, %v2528_v19  ;;  %v923_v47 = vld [vmem:[#allocation2] sm:$0xff] }
 0x183   : > { %v717_v50 = vpop.f32.mrf.mxu2  ;;  %v782_v51 = vpop.f32.mrf.mxu3  ;;  %v842_v54 = vmax.f32 %v588_v48, 0.0  ;;  %v843_v55 = vmax.f32 %v653_v49, 0.0 }
 0x184   : > { %v718_v52 = vadd.f32 %v717_v50, %v2530_v20  ;;  %v783_v53 = vadd.f32 %v782_v51, %v2532_v21 }
 0x185   : > { %906 = vst [vmem:[%s2378_s29 + $0x180] sm:$0xff] %v842_v54  ;;  %1054 = vmatmul.f32.gmra.mxu0 %v842_v54  ;;  %1119 = vmatmul.f32.gmra.mxu1 %v843_v55 }
 0x186   : > { %v844_v56 = vmax.f32 %v718_v52, 0.0  ;;  %v845_v57 = vmax.f32 %v783_v53, 0.0  ;;  %907 = vst [vmem:[%s2378_s29 + $0x188] sm:$0xff] %v843_v55 }
 0x188   : > { %908 = vst [vmem:[%s2378_s29 + $0x190] sm:$0xff] %v844_v56  ;;  %1184 = vmatmul.f32.gmra.mxu2 %v844_v56  ;;  %1249 = vmatmul.f32.gmra.mxu3 %v845_v57  ;;  %v590_v58 = vpop.f32.mrf.mxu0  ;;  %v655_v59 = vpop.f32.mrf.mxu1  ;;  %v924_v56 = vld [vmem:[#allocation2 + $0x58] sm:$0xff] }
 0x189   : > { %909 = vst [vmem:[%s2378_s29 + $0x198] sm:$0xff] %v845_v57  ;;  %v591_v60 = vadd.f32 %v590_v58, %v2526_v18  ;;  %v656_v61 = vadd.f32 %v655_v59, %v2528_v19 }
 0x18b   : > { %v720_v62 = vpop.f32.mrf.mxu2  ;;  %v785_v63 = vpop.f32.mrf.mxu3  ;;  %v846_v2 = vmax.f32 %v591_v60, 0.0  ;;  %v847_v3 = vmax.f32 %v656_v61, 0.0 }
 0x18c   : > { %v721_v0 = vadd.f32 %v720_v62, %v2530_v20  ;;  %v786_v1 = vadd.f32 %v785_v63, %v2532_v21 }
 0x18d   : > { %910 = vst [vmem:[%s2378_s29 + $0x1a0] sm:$0xff] %v846_v2  ;;  %1057 = vmatmul.f32.gmra.mxu0 %v846_v2  ;;  %1122 = vmatmul.f32.gmra.mxu1 %v847_v3 }
 0x18e   : > { %v848_v4 = vmax.f32 %v721_v0, 0.0  ;;  %v849_v5 = vmax.f32 %v786_v1, 0.0  ;;  %911 = vst [vmem:[%s2378_s29 + $0x1a8] sm:$0xff] %v847_v3  ;;  %v925_v1 = vld [vmem:[#allocation2 + $0x18] sm:$0xff] }
 0x190   : > { %912 = vst [vmem:[%s2378_s29 + $0x1b0] sm:$0xff] %v848_v4  ;;  %1187 = vmatmul.f32.gmra.mxu2 %v848_v4  ;;  %1252 = vmatmul.f32.gmra.mxu3 %v849_v5  ;;  %v593_v6 = vpop.f32.mrf.mxu0  ;;  %v658_v7 = vpop.f32.mrf.mxu1 }
 0x191   : > { %913 = vst [vmem:[%s2378_s29 + $0x1b8] sm:$0xff] %v849_v5  ;;  %v594_v8 = vadd.f32 %v593_v6, %v2526_v18  ;;  %v659_v9 = vadd.f32 %v658_v7, %v2528_v19 }
 0x193   : > { %v723_v10 = vpop.f32.mrf.mxu2  ;;  %v788_v11 = vpop.f32.mrf.mxu3  ;;  %v850_v14 = vmax.f32 %v594_v8, 0.0  ;;  %v851_v15 = vmax.f32 %v659_v9, 0.0 }
 0x194   : > { %v724_v12 = vadd.f32 %v723_v10, %v2530_v20  ;;  %v789_v13 = vadd.f32 %v788_v11, %v2532_v21  ;;  %v926_v10 = vld [vmem:[#allocation2 + $0x50] sm:$0xff] }
 0x195   : > { %914 = vst [vmem:[%s2378_s29 + $0x1c0] sm:$0xff] %v850_v14  ;;  %1060 = vmatmul.f32.gmra.mxu0 %v850_v14  ;;  %1125 = vmatmul.f32.gmra.mxu1 %v851_v15 }
 0x196   : > { %v852_v16 = vmax.f32 %v724_v12, 0.0  ;;  %v853_v17 = vmax.f32 %v789_v13, 0.0  ;;  %915 = vst [vmem:[%s2378_s29 + $0x1c8] sm:$0xff] %v851_v15 }
 0x198   : > { %916 = vst [vmem:[%s2378_s29 + $0x1d0] sm:$0xff] %v852_v16  ;;  %1190 = vmatmul.f32.gmra.mxu2 %v852_v16  ;;  %1255 = vmatmul.f32.gmra.mxu3 %v853_v17  ;;  %v596_v22 = vpop.f32.mrf.mxu0  ;;  %v661_v23 = vpop.f32.mrf.mxu1 }
 0x199   : > { %917 = vst [vmem:[%s2378_s29 + $0x1d8] sm:$0xff] %v853_v17  ;;  %v597_v24 = vadd.f32 %v596_v22, %v2526_v18  ;;  %v662_v25 = vadd.f32 %v661_v23, %v2528_v19  ;;  %v927_v23 = vld [vmem:[#allocation2 + $0x68] sm:$0xff] }
 0x19b   : > { %v726_v26 = vpop.f32.mrf.mxu2  ;;  %v791_v27 = vpop.f32.mrf.mxu3  ;;  %v854_v30 = vmax.f32 %v597_v24, 0.0  ;;  %v855_v31 = vmax.f32 %v662_v25, 0.0 }
 0x19c   : > { %v727_v28 = vadd.f32 %v726_v26, %v2530_v20  ;;  %v792_v29 = vadd.f32 %v791_v27, %v2532_v21 }
 0x19d   : > { %918 = vst [vmem:[%s2378_s29 + $0x1e0] sm:$0xff] %v854_v30  ;;  %1063 = vmatmul.f32.gmra.mxu0 %v854_v30  ;;  %1128 = vmatmul.f32.gmra.mxu1 %v855_v31 }
 0x19e   : > { %v856_v32 = vmax.f32 %v727_v28, 0.0  ;;  %v857_v33 = vmax.f32 %v792_v29, 0.0  ;;  %919 = vst [vmem:[%s2378_s29 + $0x1e8] sm:$0xff] %v855_v31 }
 0x1a0   : > { %920 = vst [vmem:[%s2378_s29 + $0x1f0] sm:$0xff] %v856_v32  ;;  %1193 = vmatmul.f32.gmra.mxu2 %v856_v32  ;;  %1258 = vmatmul.f32.gmra.mxu3 %v857_v33  ;;  %v928_v32 = vld [vmem:[#allocation2 + $0x8] sm:$0xff] }
 0x1a1   : > { %921 = vst [vmem:[%s2378_s29 + $0x1f8] sm:$0xff] %v857_v33 }
 0x1a2   : > { %v1019_v18 = vpop.f32.mrf.mxu0  ;;  %v1084_v19 = vpop.f32.mrf.mxu1 }
 0x1a3   : > { %v1085_v34 = vadd.f32 %v1084_v19, %v1019_v18 }
 0x1aa   : > { %v1022_v37 = vpop.f32.mrf.mxu0  ;;  %v1087_v21 = vpop.f32.mrf.mxu1 }
 0x1ab   : > { %v1149_v35 = vpop.f32.mrf.mxu2  ;;  %v1214_v36 = vpop.f32.mrf.mxu3  ;;  %v1088_v41 = vadd.f32 %v1087_v21, %v1022_v37  ;;  %v929_v21 = vld [vmem:[#allocation2 + $0x48] sm:$0xff] }
 0x1ac   : > { %v1150_v20 = vadd.f32 %v1149_v35, %v1085_v34 }
 0x1ae   : > { %v1215_v39 = vadd.f32 %v1214_v36, %v1150_v20 }
 0x1b0   : > { %v1262_v40 = vadd.f32 %v1215_v39, %v922_v38 }
 0x1b2   : > { %1278 = vst [vmem:[#allocation2 + $0x30] sm:$0xff] %v1262_v40  ;;  %v1025_v45 = vpop.f32.mrf.mxu0  ;;  %v1090_v46 = vpop.f32.mrf.mxu1 }
 0x1b3   : > { %v1152_v42 = vpop.f32.mrf.mxu2  ;;  %v1217_v43 = vpop.f32.mrf.mxu3  ;;  %v1091_v50 = vadd.f32 %v1090_v46, %v1025_v45  ;;  %v930_v46 = vld [vmem:[#allocation2 + $0x40] sm:$0xff] }
 0x1b4   : > { %v1153_v44 = vadd.f32 %v1152_v42, %v1088_v41 }
 0x1b6   : > { %v1218_v48 = vadd.f32 %v1217_v43, %v1153_v44 }
 0x1b8   : > { %v1263_v49 = vadd.f32 %v1218_v48, %v923_v47 }
 0x1ba   : > { %1279 = vst [vmem:[#allocation2] sm:$0xff] %v1263_v49  ;;  %v1028_v54 = vpop.f32.mrf.mxu0  ;;  %v1093_v55 = vpop.f32.mrf.mxu1 }
 0x1bb   : > { %v1155_v51 = vpop.f32.mrf.mxu2  ;;  %v1220_v52 = vpop.f32.mrf.mxu3  ;;  %v1094_v59 = vadd.f32 %v1093_v55, %v1028_v54  ;;  %v931_v55 = vld [vmem:[#allocation2 + $0x20] sm:$0xff] }
 0x1bc   : > { %v1156_v53 = vadd.f32 %v1155_v51, %v1091_v50 }
 0x1be   : > { %v1221_v57 = vadd.f32 %v1220_v52, %v1156_v53 }
 0x1c0   : > { %v1264_v58 = vadd.f32 %v1221_v57, %v924_v56 }
 0x1c2   : > { %1280 = vst [vmem:[#allocation2 + $0x58] sm:$0xff] %v1264_v58  ;;  %v1031_v63 = vpop.f32.mrf.mxu0  ;;  %v1096_v0 = vpop.f32.mrf.mxu1 }
 0x1c3   : > { %v1158_v60 = vpop.f32.mrf.mxu2  ;;  %v1223_v61 = vpop.f32.mrf.mxu3  ;;  %v1097_v4 = vadd.f32 %v1096_v0, %v1031_v63  ;;  %v932_v0 = vld [vmem:[#allocation2 + $0x10] sm:$0xff] }
 0x1c4   : > { %v1159_v62 = vadd.f32 %v1158_v60, %v1094_v59 }
 0x1c6   : > { %v1224_v2 = vadd.f32 %v1223_v61, %v1159_v62 }
 0x1c8   : > { %v1265_v3 = vadd.f32 %v1224_v2, %v925_v1 }
 0x1ca   : > { %1281 = vst [vmem:[#allocation2 + $0x18] sm:$0xff] %v1265_v3  ;;  %v1034_v8 = vpop.f32.mrf.mxu0  ;;  %v1099_v9 = vpop.f32.mrf.mxu1 }
 0x1cb   : > { %v1161_v5 = vpop.f32.mrf.mxu2  ;;  %v1226_v6 = vpop.f32.mrf.mxu3  ;;  %v1100_v13 = vadd.f32 %v1099_v9, %v1034_v8  ;;  %v933_v9 = vld [vmem:[#allocation2 + $0x38] sm:$0xff] }
 0x1cc   : > { %v1162_v7 = vadd.f32 %v1161_v5, %v1097_v4 }
 0x1ce   : > { %v1227_v11 = vadd.f32 %v1226_v6, %v1162_v7 }
 0x1d0   : > { %v1266_v12 = vadd.f32 %v1227_v11, %v926_v10 }
 0x1d2   : > { %1282 = vst [vmem:[#allocation2 + $0x50] sm:$0xff] %v1266_v12  ;;  %v1037_v17 = vpop.f32.mrf.mxu0  ;;  %v1102_v22 = vpop.f32.mrf.mxu1 }
 0x1d3   : > { %v1164_v14 = vpop.f32.mrf.mxu2  ;;  %v1229_v15 = vpop.f32.mrf.mxu3  ;;  %v1103_v26 = vadd.f32 %v1102_v22, %v1037_v17  ;;  %v934_v22 = vld [vmem:[#allocation2 + $0x60] sm:$0xff] }
 0x1d4   : > { %v1165_v16 = vadd.f32 %v1164_v14, %v1100_v13 }
 0x1d6   : > { %v1230_v24 = vadd.f32 %v1229_v15, %v1165_v16 }
 0x1d8   : > { %v1267_v25 = vadd.f32 %v1230_v24, %v927_v23 }
 0x1da   : > { %1283 = vst [vmem:[#allocation2 + $0x68] sm:$0xff] %v1267_v25  ;;  %v1040_v30 = vpop.f32.mrf.mxu0  ;;  %v1105_v31 = vpop.f32.mrf.mxu1 }
 0x1db   : > { %v1167_v27 = vpop.f32.mrf.mxu2  ;;  %v1232_v28 = vpop.f32.mrf.mxu3  ;;  %v1106_v19 = vadd.f32 %v1105_v31, %v1040_v30  ;;  %v935_v31 = vld [vmem:[#allocation2 + $0x70] sm:$0xff] }
 0x1dc   : > { %v1168_v29 = vadd.f32 %v1167_v27, %v1103_v26 }
 0x1de   : > { %v1233_v33 = vadd.f32 %v1232_v28, %v1168_v29 }
 0x1e0   : > { %v1268_v18 = vadd.f32 %v1233_v33, %v928_v32 }
 0x1e2   : > { %1284 = vst [vmem:[#allocation2 + $0x8] sm:$0xff] %v1268_v18  ;;  %v1043_v20 = vpop.f32.mrf.mxu0  ;;  %v1108_v37 = vpop.f32.mrf.mxu1 }
 0x1e3   : > { %v1170_v34 = vpop.f32.mrf.mxu2  ;;  %v1235_v35 = vpop.f32.mrf.mxu3  ;;  %v1109_v40 = vadd.f32 %v1108_v37, %v1043_v20 }
 0x1e4   : > { %v1171_v36 = vadd.f32 %v1170_v34, %v1106_v19 }
 0x1e6   : > { %v1236_v38 = vadd.f32 %v1235_v35, %v1171_v36  ;;  %v936_v36 = vld [vmem:[#allocation2 + $0x78] sm:$0xff] }
 0x1e8   : > { %v1269_v39 = vadd.f32 %v1236_v38, %v929_v21 }
 0x1ea   : > { %1285 = vst [vmem:[#allocation2 + $0x48] sm:$0xff] %v1269_v39  ;;  %v1046_v44 = vpop.f32.mrf.mxu0  ;;  %v1111_v45 = vpop.f32.mrf.mxu1 }
 0x1eb   : > { %v1173_v41 = vpop.f32.mrf.mxu2  ;;  %v1238_v42 = vpop.f32.mrf.mxu3  ;;  %v1112_v49 = vadd.f32 %v1111_v45, %v1046_v44 }
 0x1ec   : > { %v1174_v43 = vadd.f32 %v1173_v41, %v1109_v40 }
 0x1ee   : > { %v1239_v47 = vadd.f32 %v1238_v42, %v1174_v43  ;;  %v937_v43 = vld [vmem:[#allocation2 + $0x28] sm:$0xff] }
 0x1f0   : > { %v1270_v48 = vadd.f32 %v1239_v47, %v930_v46 }
 0x1f2   : > { %1286 = vst [vmem:[#allocation2 + $0x40] sm:$0xff] %v1270_v48  ;;  %v1049_v53 = vpop.f32.mrf.mxu0  ;;  %v1114_v54 = vpop.f32.mrf.mxu1 }
 0x1f3   : > { %v1176_v50 = vpop.f32.mrf.mxu2  ;;  %v1241_v51 = vpop.f32.mrf.mxu3  ;;  %v1115_v58 = vadd.f32 %v1114_v54, %v1049_v53 }
 0x1f4   : > { %v1177_v52 = vadd.f32 %v1176_v50, %v1112_v49 }
 0x1f6   : > { %v1242_v56 = vadd.f32 %v1241_v51, %v1177_v52 }
 0x1f8   : > { %v1271_v57 = vadd.f32 %v1242_v56, %v931_v55 }
 0x1fa   : > { %1287 = vst [vmem:[#allocation2 + $0x20] sm:$0xff] %v1271_v57  ;;  %v1052_v62 = vpop.f32.mrf.mxu0  ;;  %v1117_v63 = vpop.f32.mrf.mxu1 }
 0x1fb   : > { %v1179_v59 = vpop.f32.mrf.mxu2  ;;  %v1244_v60 = vpop.f32.mrf.mxu3  ;;  %v1118_v3 = vadd.f32 %v1117_v63, %v1052_v62 }
 0x1fc   : > { %v1180_v61 = vadd.f32 %v1179_v59, %v1115_v58 }
 0x1fe   : > { %v1245_v1 = vadd.f32 %v1244_v60, %v1180_v61 }
 0x200   : > { %v1272_v2 = vadd.f32 %v1245_v1, %v932_v0 }
 0x202   : > { %1288 = vst [vmem:[#allocation2 + $0x10] sm:$0xff] %v1272_v2  ;;  %v1055_v7 = vpop.f32.mrf.mxu0  ;;  %v1120_v8 = vpop.f32.mrf.mxu1 }
 0x203   : > { %v1182_v4 = vpop.f32.mrf.mxu2  ;;  %v1247_v5 = vpop.f32.mrf.mxu3  ;;  %v1121_v12 = vadd.f32 %v1120_v8, %v1055_v7 }
 0x204   : > { %v1183_v6 = vadd.f32 %v1182_v4, %v1118_v3 }
 0x206   : > { %v1248_v10 = vadd.f32 %v1247_v5, %v1183_v6 }
 0x208   : > { %v1273_v11 = vadd.f32 %v1248_v10, %v933_v9 }
 0x20a   : > { %1289 = vst [vmem:[#allocation2 + $0x38] sm:$0xff] %v1273_v11  ;;  %v1058_v16 = vpop.f32.mrf.mxu0  ;;  %v1123_v17 = vpop.f32.mrf.mxu1 }
 0x20b   : > { %v1185_v13 = vpop.f32.mrf.mxu2  ;;  %v1250_v14 = vpop.f32.mrf.mxu3  ;;  %v1124_v25 = vadd.f32 %v1123_v17, %v1058_v16 }
 0x20c   : > { %v1186_v15 = vadd.f32 %v1185_v13, %v1121_v12 }
 0x20e   : > { %v1251_v23 = vadd.f32 %v1250_v14, %v1186_v15 }
 0x210   : > { %v1274_v24 = vadd.f32 %v1251_v23, %v934_v22 }
 0x212   : > { %1290 = vst [vmem:[#allocation2 + $0x60] sm:$0xff] %v1274_v24  ;;  %v1061_v29 = vpop.f32.mrf.mxu0  ;;  %v1126_v30 = vpop.f32.mrf.mxu1 }
 0x213   : > { %v1188_v26 = vpop.f32.mrf.mxu2  ;;  %v1253_v27 = vpop.f32.mrf.mxu3  ;;  %v1127_v18 = vadd.f32 %v1126_v30, %v1061_v29 }
 0x214   : > { %v1189_v28 = vadd.f32 %v1188_v26, %v1124_v25 }
 0x216   : > { %v1254_v32 = vadd.f32 %v1253_v27, %v1189_v28 }
 0x218   : > { %v1275_v33 = vadd.f32 %v1254_v32, %v935_v31 }
 0x21a   : > { %1291 = vst [vmem:[#allocation2 + $0x70] sm:$0xff] %v1275_v33  ;;  %v1064_v20 = vpop.f32.mrf.mxu0  ;;  %v1129_v37 = vpop.f32.mrf.mxu1 }
 0x21b   : > { %v1191_v19 = vpop.f32.mrf.mxu2  ;;  %v1256_v34 = vpop.f32.mrf.mxu3  ;;  %v1130_v39 = vadd.f32 %v1129_v37, %v1064_v20 }
 0x21c   : > { %v1192_v35 = vadd.f32 %v1191_v19, %v1127_v18 }
 0x21e   : > { %v1257_v21 = vadd.f32 %v1256_v34, %v1192_v35 }
 0x220   : > { %v1276_v38 = vadd.f32 %v1257_v21, %v936_v36 }
 0x222   : > { %1292 = vst [vmem:[#allocation2 + $0x78] sm:$0xff] %v1276_v38 }
 0x223   : > { %v1194_v40 = vpop.f32.mrf.mxu2  ;;  %v1259_v41 = vpop.f32.mrf.mxu3 }
 0x224   : > { %v1195_v42 = vadd.f32 %v1194_v40, %v1130_v39 }
 0x226   : > { %v1260_v44 = vadd.f32 %v1259_v41, %v1195_v42  ;;  %1297 = sbr.rel (%p1600_p12) target bundleno = 574 (0x23e), region = 64 }
 0x228   : > { %v1277_v45 = vadd.f32 %v1260_v44, %v937_v43 }
 0x22a   : > { %1293 = vst [vmem:[#allocation2 + $0x28] sm:$0xff] %v1277_v45 }
 0x22b   : > { %v1298_v46 = vld [vmem:[#allocation2 + $0x30] sm:$0xff]  ;;  %v1773_v47 = vld [vmem:[%s2839_s7] ss:$0 sm:$0xff]  ;;  %v1300_v49 = vld [vmem:[#allocation2 + $0x58] sm:$0xff] }
 0x22c   : > { %v1299_v48 = vld [vmem:[#allocation2] sm:$0xff]  ;;  %v1301_v50 = vld [vmem:[#allocation2 + $0x18] sm:$0xff]  ;;  %v1318_v51 = vadd.f32 %v1773_v47, %v1298_v46  ;;  %v1320_v53 = vadd.f32 %v1773_v47, %v1300_v49  ;;  %v1302_v54 = vld [vmem:[#allocation2 + $0x50] sm:$0xff] }
 0x22d   : > { %v1319_v52 = vadd.f32 %v1773_v47, %v1299_v48  ;;  %v1303_v55 = vld [vmem:[#allocation2 + $0x68] sm:$0xff]  ;;  %v1321_v56 = vadd.f32 %v1773_v47, %v1301_v50  ;;  %v1322_v58 = vadd.f32 %v1773_v47, %v1302_v54  ;;  %v1306_v61 = vld [vmem:[#allocation2 + $0x40] sm:$0xff]  ;;  %v1308_v1 = vld [vmem:[#allocation2 + $0x10] sm:$0xff] }
 0x22e   : > { %v1304_v57 = vld [vmem:[#allocation2 + $0x8] sm:$0xff]  ;;  %1334 = vst [vmem:[%s2376_s16] sm:$0xff] %v1318_v51  ;;  %v1323_v60 = vadd.f32 %v1773_v47, %v1303_v55  ;;  %v1307_v63 = vld [vmem:[#allocation2 + $0x20] sm:$0xff]  ;;  %v1326_v2 = vadd.f32 %v1773_v47, %v1306_v61  ;;  %v1309_v3 = vld [vmem:[#allocation2 + $0x38] sm:$0xff]  ;;  %v1328_v6 = vadd.f32 %v1773_v47, %v1308_v1 }
 0x22f   : > { %v1305_v59 = vld [vmem:[#allocation2 + $0x48] sm:$0xff]  ;;  %1335 = vst [vmem:[%s2376_s16 + $0x8] sm:$0xff] %v1319_v52  ;;  %v1324_v62 = vadd.f32 %v1773_v47, %v1304_v57  ;;  %v1327_v4 = vadd.f32 %v1773_v47, %v1307_v63  ;;  %v1310_v5 = vld [vmem:[#allocation2 + $0x60] sm:$0xff]  ;;  %v1311_v7 = vld [vmem:[#allocation2 + $0x70] sm:$0xff]  ;;  %v1329_v8 = vadd.f32 %v1773_v47, %v1309_v3 }
 0x230   : > { %1336 = vst [vmem:[%s2376_s16 + $0x10] sm:$0xff] %v1320_v53  ;;  %v1325_v0 = vadd.f32 %v1773_v47, %v1305_v59  ;;  %v1312_v9 = vld [vmem:[#allocation2 + $0x78] sm:$0xff]  ;;  %v1330_v10 = vadd.f32 %v1773_v47, %v1310_v5  ;;  %v1331_v12 = vadd.f32 %v1773_v47, %v1311_v7 }
 0x231   : > { %1337 = vst [vmem:[%s2376_s16 + $0x18] sm:$0xff] %v1321_v56  ;;  %v1313_v11 = vld [vmem:[#allocation2 + $0x28] sm:$0xff]  ;;  %v1332_v13 = vadd.f32 %v1773_v47, %v1312_v9 }
 0x232   : > { %1338 = vst [vmem:[%s2376_s16 + $0x20] sm:$0xff] %v1322_v58  ;;  %v1333_v14 = vadd.f32 %v1773_v47, %v1313_v11 }
 0x233   : > { %1339 = vst [vmem:[%s2376_s16 + $0x28] sm:$0xff] %v1323_v60 }
 0x234   : > { %1340 = vst [vmem:[%s2376_s16 + $0x30] sm:$0xff] %v1324_v62 }
 0x235   : > { %1341 = vst [vmem:[%s2376_s16 + $0x38] sm:$0xff] %v1325_v0 }
 0x236   : > { %1342 = vst [vmem:[%s2376_s16 + $0x40] sm:$0xff] %v1326_v2 }
 0x237   : > { %1343 = vst [vmem:[%s2376_s16 + $0x48] sm:$0xff] %v1327_v4 }
 0x238   : > { %1344 = vst [vmem:[%s2376_s16 + $0x50] sm:$0xff] %v1328_v6 }
 0x239   : > { %1345 = vst [vmem:[%s2376_s16 + $0x58] sm:$0xff] %v1329_v8 }
 0x23a   : > { %1346 = vst [vmem:[%s2376_s16 + $0x60] sm:$0xff] %v1330_v10 }
 0x23b   : > { %1347 = vst [vmem:[%s2376_s16 + $0x68] sm:$0xff] %v1331_v12 }
 0x23c   : > { %1348 = vst [vmem:[%s2376_s16 + $0x70] sm:$0xff] %v1332_v13 }
 0x23d   : > { %1349 = vst [vmem:[%s2376_s16 + $0x78] sm:$0xff] %v1333_v14 }
 0x23e PF: > { %s2840_s5 = sld [smem:[#allocation25_spill]]  ;;  %s1368_s9 = sshll.u32 %s2376_s16, 4  ;;  %s1369_s9 = int_to_ptr.vmem [resolvable:$true] %s1368_s9 }
 0x23f   : > { %s2841_s15 = sld [smem:[#allocation24_spill]]  ;;  %s1351_s17 = scalar_lea.sflag [#allocation5], %s2347_s0 }
 0x240   : > { %s2842_s23 = sld [smem:[#allocation40_spill]] }
 0x244   : > { %s1614_s11 = sshll.u32 %s2840_s5, 7 }
 0x245   : > { %s1606_s21 = sshll.u32 %s2841_s15, 2 }
 0x246   : > { %s2843_s13 = smov %s2842_s23  ;;  %s1367_s27 = scalar_lea.hbm %s2842_s23, %s1614_s11 }
 0x247   : > { %s1370_s10 = sshll.u32 %s1367_s27, 4  ;;  %s1914_s4 = scalar_lea.hbm %s2843_s13, 256  ;;  %s1371_s10 = int_to_ptr.hbm [resolvable:$true] %s1370_s10 }
 0x248   : > { %s1908_s30 = sshra.s32 %s1371_s10, 4  ;;  %s1909_s30 = int_to_ptr.hbm [resolvable:$true] %s1908_s30 }
 0x249   : > { %s1910_s19 = scalar_lea.hbm %s1909_s30, 128  ;;  %p1915_p2 = scmp.lt.s32.totalorder %s1909_s30, %s2843_s13 }
 0x24a   : > { %p1911_p4 = scmp.ne.s32.totalorder %s1909_s30, %s1910_s19  ;;  %p1916_p13 = scmp.lt.s32.totalorder %s1914_s4, %s1910_s19 }
 0x24c   : > { %p1912_p0 = pnand %p1911_p4, %p2291_p1  ;;  %p1917_p3 = por %p1916_p13, %p1915_p2 }
 0x24e   : > { %p1913_p9 = pneg %p1912_p0 }
 0x250   : > { %p1918_p11 = pnand %p1917_p3, %p1913_p9 }
 0x252   : > { %1921 = shalt.err (!%p1918_p11)
}
 0x253   : > { %s2088_s0 = smov 128   ;;  %s2089_s16 = smov 8  }
 0x254   : > { %1624 = dma.vmem_to_hbm [thread:$0]  (%p2291_p1), %s1369_s9, 2048, %s1371_s10, %s1351_s17, %s2088_s0, %s2088_s0, %s2089_s16  }
 0x255   : > { %s1385_s5 = sadd.s32 %s1614_s11, %s1606_s21  ;;  %s1388_s26 = sshll.u32 %s2378_s29, 4  ;;  %s1389_s26 = int_to_ptr.vmem [resolvable:$true] %s1388_s26 }
 0x256   : > { %s1608_s15 = sshll.u32 %s1385_s5, 3  ;;  %s2844_s27 = sld [smem:[#allocation41_spill]] }
 0x257   : > { %s1356_s19 = scalar_lea.sflag [#allocation13], %s414_s12 }
 0x25c   : > { %s2845_s1 = smov %s2844_s27  ;;  %s1387_s24 = scalar_lea.hbm %s2844_s27, %s1608_s15 }
 0x25d   : > { %s1390_s30 = sshll.u32 %s1387_s24, 4  ;;  %s1942_s29 = scalar_lea.hbm %s2845_s1, 2048  ;;  %s1391_s30 = int_to_ptr.hbm [resolvable:$true] %s1390_s30 }
 0x25e   : > { %s1936_s4 = sshra.s32 %s1391_s30, 4  ;;  %s1937_s4 = int_to_ptr.hbm [resolvable:$true] %s1936_s4 }
 0x25f   : > { %s1938_s18 = scalar_lea.hbm %s1937_s4, 512  ;;  %p1943_p1 = scmp.lt.s32.totalorder %s1937_s4, %s2845_s1 }
 0x260   : > { %p1939_p5 = scmp.ne.s32.totalorder %s1937_s4, %s1938_s18  ;;  %p1944_p4 = scmp.lt.s32.totalorder %s1942_s29, %s1938_s18 }
 0x262   : > { %p1940_p8 = pnand %p1939_p5, %p2310_p7  ;;  %p1945_p0 = por %p1944_p4, %p1943_p1 }
 0x264   : > { %p1941_p12 = pneg %p1940_p8 }
 0x266   : > { %p1946_p9 = pnand %p1945_p0, %p1941_p12 }
 0x268   : > { %1949 = shalt.err (!%p1946_p9)
}
 0x269   : > { %s2090_s12 = smov 512   ;;  %s2091_s21 = smov 1024  }
 0x26a   : > { %s2092_s17 = smov 32  }
 0x26b   : > { %1625 = dma.vmem_to_hbm [thread:$0]  (%p2310_p7), %s1389_s26, 8192, %s1391_s30, %s1356_s19, %s2090_s12, %s2091_s21, %s2092_s17  }
 0x26c PF: > { %s2846_s7 = sld [smem:[#allocation27_spill]] }
 0x26d   : > { %s2847_s0 = sld [smem:[#allocation22_spill]] }
 0x272   : > { %p1649_p2 = scmp.ge.s32.totalorder %s2846_s7, 2 }
 0x273   : > { %s1405_s5 = sand.u32 1, %s2847_s0  }
 0x274   : > { %p1642_p13 = pnand %p1649_p2, %p2298_p6  ;;  %s1406_s15 = scalar_lea.sflag [#allocation5], %s1405_s5 }
 0x276   : > { %p1643_p3 = pneg %p1642_p13 }
 0x278   : > { %2019 = dma.done.wait (%p1643_p3), %s1406_s15, 2048  }
 0x279   : > { %2021 = vsyncadd (%p1643_p3), %s1406_s15, 4294965248  ;;  %s2849_s6 = sld [smem:[#allocation19_spill]]  ;;  %p1645_p11 = pnand %p1649_p2, %p2314_p10 }
 0x27b   : > { %p1646_p5 = pneg %p1645_p11 }
 0x27f   : > { %s1415_s27 = sand.u32 1, %s2849_s6  }
 0x280   : > { %s1416_s14 = scalar_lea.sflag [#allocation13], %s1415_s27 }
 0x281   : > { %2023 = dma.done.wait (%p1646_p5), %s1416_s14, 8192  }
 0x282   : > { %2025 = vsyncadd (%p1646_p5), %s1416_s14, 4294959104  ;;  %s32_s10 = sadd.s32 1, %s2846_s7   ;;  %s2852_s24 = sld [smem:[#allocation20_spill]] }
 0x283   : > { %p2723_p7 = scmp.ge.s32.totalorder %s32_s10, 6   ;;  %s2853_s23 = sld [smem:[#allocation35_spill]] }
 0x284   : > { %s2854_s30 = sld [smem:[#allocation21_spill]]  ;;  %s2862_s21 = smov %s2032_s22 }
 0x285   : > { %s2855_s19 = sld [smem:[#allocation32_spill]]  ;;  %s2867_s27 = smov %s2056_s28 }
 0x286   : > { %s2856_s4 = sld [smem:[#allocation23_spill]] }
 0x287   : > { %s2857_s29 = sld [smem:[#allocation33_spill]] }
 0x288   : > { %s2858_s7 = sld [smem:[#allocation26_spill]]  ;;  %s2863_s22 = smov %s2852_s24 }
 0x289   : > { %s2859_s18 = sld [smem:[#allocation29_spill]]  ;;  %s2864_s24 = smov %s2044_s25 }
 0x28a   : > { %s2860_s9 = sld [smem:[#allocation31_spill]]  ;;  %s2865_s25 = smov %s2854_s30 }
 0x28b   : > { %s2866_s26 = smov %s2855_s19  ;;  %s2869_s30 = smov %s2072_s8 }
 0x28c   : > { %s2868_s28 = smov %s2856_s4  ;;  %31 = sbr.rel (!%p2723_p7) target bundleno = 22 (0x16), region = 147 }
 0x28f   : > { %s2870_s8 = smov %s2859_s18 }
 0x291   :  { %1422 = vsyncpa [#allocation4], 1 }
 0x292   :  { %1424 = vsyncpa [#allocation4 + $0x1], 1 }
 0x293   :  { %1425 = vsyncpa [#allocation7], 1 }
 0x294   :  { %1427 = vsyncpa [#allocation7 + $0x1], 1 }
 0x295   :  { %1428 = vsyncpa [#allocation10], 1 }
 0x296   :  { %1430 = vsyncpa [#allocation10 + $0x1], 1 }
 0x297   :  { %1431 = vsyncpa [#allocation5], 1 }
 0x298   :  { %1433 = vsyncpa [#allocation5 + $0x1], 1 }
 0x299   :  { %1434 = vsyncpa [#allocation13], 1 }
 0x29a   :  { %1436 = vsyncpa [#allocation13 + $0x1], 1 }

</bundles_post_ra>
